<compile_context>
chip_gen: v7x
topology: tpu7x:2x2x1
jax: 0.10.0
libtpu: 0.0.40
codegen_flags: <defaults>
</compile_context>

<pallas_src>
import jax
import jax.numpy as jnp
from jax.experimental import pallas as pl
from jax.experimental.pallas import tpu as pltpu

HIDDEN = 768
NUM_CLASSES = 2
OUT_PAD = 128  # lane-dense output width (first 2 lanes are the real probs)


def _round_up(x, m):
    return ((x + m - 1) // m) * m


def _default_tile_n():
    # 128 on v5e (4x128 MXU, lower HBM BW), 256 on v6e/v7x (2x256 MXU).
    try:
        kind = jax.devices()[0].device_kind.lower()
    except Exception:
        kind = ""
    return 128 if "v5" in kind else 256


def coherence_decoder_kernel(x_ref, w1_ref, b1_ref, w2d_ref, b2d_ref, o_ref):
    # x tile: [tile_n, 768] (f32 or bf16); W1: [768, 768] bf16, resident across
    # the grid (index_map -> (0,0)).  MXU accumulates in f32.
    x = x_ref[...].astype(jnp.bfloat16)
    h = jnp.dot(x, w1_ref[...], preferred_element_type=jnp.float32)
    h = jnp.maximum(h + b1_ref[...], 0.0)           # bias + ReLU in f32
    # Dropout(p=0.1): identity at inference time.
    # 2-class softmax == sigmoid of the logit difference (exact normalization).
    d = jnp.dot(h, w2d_ref[...], preferred_element_type=jnp.float32) + b2d_ref[...]
    p0 = jax.nn.sigmoid(d)                          # [tile_n, 1], prob of class 0
    # Lane-dense store: column 0 = p0, column 1 = 1 - p0, rest zeros.
    col = jax.lax.broadcasted_iota(jnp.int32, o_ref.shape, 1)
    o_ref[...] = jnp.where(col == 0, p0, jnp.where(col == 1, 1.0 - p0, 0.0))


def prepare_params(w1, b1, w2, b2):
    """One-time preprocessing, hoisted out of the per-call hot path.

    Takes PyTorch-layout Linear params (W: [out, in], b: [out]) and returns
    kernel-ready operands: W1 transposed to [in, out] and cast to bf16 once,
    b1 as [1, 768] f32, and W2/b2 folded into the logit-difference column /
    scalar used by the sigmoid formulation.
    """
    w1_bf = jnp.asarray(w1, jnp.float32).T.astype(jnp.bfloat16)      # [768, 768] bf16
    b1_r = jnp.asarray(b1, jnp.float32).reshape(1, HIDDEN)           # [1, 768]
    w2d = (jnp.asarray(w2, jnp.float32)[0, :]
           - jnp.asarray(w2, jnp.float32)[1, :]).reshape(HIDDEN, 1)  # [768, 1]
    b2d = (jnp.asarray(b2, jnp.float32)[0]
           - jnp.asarray(b2, jnp.float32)[1]).reshape(1, 1)          # [1, 1]
    return w1_bf, b1_r, w2d, b2d


def coherence_head(cls_emb, w1_bf, b1, w2d, b2d, *, tile_n=None):
    """cls_emb: [B, 3, 768] CLS embeddings -> [B, 3, 2] softmax probabilities."""
    B, S, D = cls_emb.shape
    assert D == HIDDEN
    N = B * S
    x = cls_emb.reshape(N, D)  # bf16 cast happens inside the kernel

    if tile_n is None:
        tile_n = _default_tile_n()
    tile_n = min(tile_n, _round_up(N, 8))
    n_pad = _round_up(N, tile_n)
    if n_pad != N:
        x = jnp.pad(x, ((0, n_pad - N), (0, 0)))

    grid = (n_pad // tile_n,)
    # Only split rows across v7x's two TensorCores when the per-core work
    # amortizes the duplicated resident W1 fetch; tiny batches stay single-core.
    dim_sem = ("parallel",) if n_pad >= 512 else ("arbitrary",)

    bytes_accessed = (
        w1_bf.size * w1_bf.dtype.itemsize        # W1 (bf16), DMA'd once, dominant
        + x.size * x.dtype.itemsize              # x tiles
        + b1.size * 4 + w2d.size * 4 + b2d.size * 4
        + n_pad * OUT_PAD * 4                    # lane-dense output
    )
    cost = pl.CostEstimate(
        flops=2 * n_pad * D * D + 2 * n_pad * D,
        transcendentals=n_pad,                   # one exp per row (sigmoid)
        bytes_accessed=bytes_accessed,
    )

    out = pl.pallas_call(
        coherence_decoder_kernel,
        out_shape=jax.ShapeDtypeStruct((n_pad, OUT_PAD), jnp.float32),
        grid=grid,
        in_specs=[
            pl.BlockSpec((tile_n, D), lambda i: (i, 0)),   # x tiles (pipelined)
            pl.BlockSpec((D, D), lambda i: (0, 0)),        # W1 (bf16) resident
            pl.BlockSpec((1, D), lambda i: (0, 0)),        # b1 resident
            pl.BlockSpec((D, 1), lambda i: (0, 0)),        # w2 diff column resident
            pl.BlockSpec((1, 1), lambda i: (0, 0)),        # b2 diff scalar resident
        ],
        out_specs=pl.BlockSpec((tile_n, OUT_PAD), lambda i: (i, 0)),
        compiler_params=pltpu.CompilerParams(
            dimension_semantics=dim_sem,
            vmem_limit_bytes=8 << 20,            # actual footprint ~3-4 MiB
        ),
        cost_estimate=cost,
    )(x, w1_bf, b1, w2d, b2d)

    return out[:N, :NUM_CLASSES].reshape(B, S, NUM_CLASSES)


def init_params(key):
    # Deterministic synthetic parameters in PyTorch Linear layout
    # (weight: [out_features, in_features], bias: [out_features]).
    k1, k2, k3, k4 = jax.random.split(key, 4)
    w1 = jax.random.normal(k1, (HIDDEN, HIDDEN), jnp.float32) * 0.02
    b1 = jax.random.normal(k2, (HIDDEN,), jnp.float32) * 0.02
    w2 = jax.random.normal(k3, (NUM_CLASSES, HIDDEN), jnp.float32) * 0.02
    b2 = jax.random.normal(k4, (NUM_CLASSES,), jnp.float32) * 0.02
    return w1, b1, w2, b2


def reference(cls_emb, w1, b1, w2, b2):
    # Full-precision f32 reference of the decoder head + softmax.
    h = jnp.maximum(cls_emb @ w1.T + b1, 0.0)
    logits = h @ w2.T + b2
    return jax.nn.softmax(logits, axis=-1)


if __name__ == "__main__":
    key = jax.random.PRNGKey(0)
    k_params, k_data = jax.random.split(key)

    w1, b1, w2, b2 = init_params(k_params)
    # One-time weight preprocessing (outside the hot path).
    prepared = prepare_params(w1, b1, w2, b2)

    # Batch of 2 samples, each with (pos, neg1, neg2) CLS embeddings of dim 768.
    B = 2
    cls_emb = jax.random.normal(k_data, (B, 3, HIDDEN), jnp.float32)

    out = coherence_head(cls_emb, *prepared)
    out = jax.block_until_ready(out)

    ref = reference(cls_emb, w1, b1, w2, b2)
    assert out.shape == (B, 3, NUM_CLASSES)
    # Sigmoid formulation normalizes exactly (up to f32 rounding).
    assert jnp.allclose(jnp.sum(out, axis=-1), 1.0, atol=1e-5)
    # Matches the f32 reference within bf16-matmul tolerance.
    assert jnp.allclose(out, ref, atol=2e-2, rtol=2e-2), (out, ref)

    print("KERNEL_OK")
</pallas_src>

<mosaic_0001>
module attributes {stable_mosaic.version = 11 : i64} {
  func.func @coherence_decoder_kernel(%arg0: i32, %arg1: memref<8x768xf32, #tpu.memory_space<vmem>>, %arg2: memref<768x768xbf16, #tpu.memory_space<vmem>>, %arg3: memref<1x768xf32, #tpu.memory_space<vmem>>, %arg4: memref<768x1xf32, #tpu.memory_space<vmem>>, %arg5: memref<1x1xf32, #tpu.memory_space<vmem>>, %arg6: memref<8x128xf32, #tpu.memory_space<vmem>>) attributes {dimension_semantics = [#tpu.dimension_semantics<arbitrary>], iteration_bounds = array<i64: 1>, scalar_prefetch = 0 : i64, scratch_operands = 0 : i64, tpu.core_type = #tpu.core_type<tc>, window_params = [{transform_indices = @transform_0, window_bounds = array<i64: 8, 768>}, {pipeline_mode = #tpu.pipeline_mode<synchronous>, transform_indices = @transform_1, window_bounds = array<i64: 768, 768>}, {pipeline_mode = #tpu.pipeline_mode<synchronous>, transform_indices = @transform_2, window_bounds = array<i64: 1, 768>}, {pipeline_mode = #tpu.pipeline_mode<synchronous>, transform_indices = @transform_3, window_bounds = array<i64: 768, 1>}, {pipeline_mode = #tpu.pipeline_mode<synchronous>, transform_indices = @transform_4, window_bounds = array<i64: 1, 1>}, {transform_indices = @transform_5, window_bounds = array<i64: 8, 128>}]} {
    %c0 = arith.constant 0 : index
    %c0_0 = arith.constant 0 : index
    %0 = vector.load %arg1[%c0, %c0_0] : memref<8x768xf32, #tpu.memory_space<vmem>>, vector<8x768xf32>
    %1 = arith.truncf %0 : vector<8x768xf32> to vector<8x768xbf16>
    %c0_1 = arith.constant 0 : index
    %c0_2 = arith.constant 0 : index
    %2 = vector.load %arg2[%c0_1, %c0_2] : memref<768x768xbf16, #tpu.memory_space<vmem>>, vector<768x768xbf16>
    %cst = arith.constant dense<0.000000e+00> : vector<8x768xf32>
    %3 = tpu.matmul %1, %2, %cst {dimension_numbers = #tpu.dot_dimension_numbers<[1], [0], [0], [1], [0, 0, 1, 1], [], []>} : vector<8x768xbf16>, vector<768x768xbf16>, vector<8x768xf32> -> vector<8x768xf32>
    %c0_3 = arith.constant 0 : index
    %c0_4 = arith.constant 0 : index
    %4 = vector.load %arg3[%c0_3, %c0_4] : memref<1x768xf32, #tpu.memory_space<vmem>>, vector<1x768xf32>
    %5 = vector.broadcast %4 : vector<1x768xf32> to vector<8x768xf32>
    %6 = arith.addf %3, %5 : vector<8x768xf32>
    %cst_5 = arith.constant 0.000000e+00 : f32
    %7 = vector.broadcast %cst_5 : f32 to vector<8x768xf32>
    %8 = arith.maximumf %6, %7 : vector<8x768xf32>
    %c0_6 = arith.constant 0 : index
    %c0_7 = arith.constant 0 : index
    %9 = vector.load %arg4[%c0_6, %c0_7] : memref<768x1xf32, #tpu.memory_space<vmem>>, vector<768x1xf32>
    %cst_8 = arith.constant dense<0.000000e+00> : vector<8x1xf32>
    %10 = tpu.matmul %8, %9, %cst_8 {dimension_numbers = #tpu.dot_dimension_numbers<[1], [0], [0], [1], [0, 0, 1, 1], [], []>} : vector<8x768xf32>, vector<768x1xf32>, vector<8x1xf32> -> vector<8x1xf32>
    %c0_9 = arith.constant 0 : index
    %c0_10 = arith.constant 0 : index
    %11 = vector.load %arg5[%c0_9, %c0_10] : memref<1x1xf32, #tpu.memory_space<vmem>>, vector<1x1xf32>
    %12 = vector.broadcast %11 : vector<1x1xf32> to vector<8x1xf32>
    %13 = arith.addf %10, %12 : vector<8x1xf32>
    %14 = arith.negf %13 : vector<8x1xf32>
    %15 = math.exp %14 : vector<8x1xf32>
    %cst_11 = arith.constant 1.000000e+00 : f32
    %16 = vector.broadcast %cst_11 : f32 to vector<8x1xf32>
    %17 = arith.addf %16, %15 : vector<8x1xf32>
    %18 = arith.divf %16, %17 : vector<8x1xf32>
    %19 = tpu.iota {dimensions = array<i32: 1>} : vector<8x128xi32>
    %c0_i32 = arith.constant 0 : i32
    %20 = vector.broadcast %c0_i32 : i32 to vector<8x128xi32>
    %21 = arith.cmpi eq, %19, %20 : vector<8x128xi32>
    %c1_i32 = arith.constant 1 : i32
    %22 = vector.broadcast %c1_i32 : i32 to vector<8x128xi32>
    %23 = arith.cmpi eq, %19, %22 : vector<8x128xi32>
    %cst_12 = arith.constant 1.000000e+00 : f32
    %24 = vector.broadcast %cst_12 : f32 to vector<8x1xf32>
    %25 = arith.subf %24, %18 : vector<8x1xf32>
    %cst_13 = arith.constant 0.000000e+00 : f32
    %26 = vector.shape_cast %25 : vector<8x1xf32> to vector<8x1xf32>
    %27 = vector.broadcast %26 : vector<8x1xf32> to vector<8x128xf32>
    %28 = vector.broadcast %cst_13 : f32 to vector<8x128xf32>
    %29 = arith.select %23, %27, %28 : vector<8x128xi1>, vector<8x128xf32>
    %30 = vector.shape_cast %18 : vector<8x1xf32> to vector<8x1xf32>
    %31 = vector.broadcast %30 : vector<8x1xf32> to vector<8x128xf32>
    %32 = arith.select %21, %31, %29 : vector<8x128xi1>, vector<8x128xf32>
    %c0_14 = arith.constant 0 : index
    %c0_15 = arith.constant 0 : index
    %33 = vector.load %arg6[%c0_14, %c0_15] : memref<8x128xf32, #tpu.memory_space<vmem>>, vector<8x128xf32>
    tpu.vector_store %arg6[%c0_14, %c0_15], %32 {strides = array<i32>} : memref<8x128xf32, #tpu.memory_space<vmem>>, vector<8x128xf32>,
    return
  }
  func.func @transform_0(%arg0: i32) -> (i32, i32) {
    %c0_i32 = arith.constant 0 : i32
    %c0_i32_0 = arith.constant 0 : i32
    return %arg0, %c0_i32 : i32, i32
  }
  func.func @transform_1(%arg0: i32) -> (i32, i32) {
    %c0_i32 = arith.constant 0 : i32
    %c0_i32_0 = arith.constant 0 : i32
    %c0_i32_1 = arith.constant 0 : i32
    return %c0_i32, %c0_i32_0 : i32, i32
  }
  func.func @transform_2(%arg0: i32) -> (i32, i32) {
    %c0_i32 = arith.constant 0 : i32
    %c0_i32_0 = arith.constant 0 : i32
    %c0_i32_1 = arith.constant 0 : i32
    return %c0_i32, %c0_i32_0 : i32, i32
  }
  func.func @transform_3(%arg0: i32) -> (i32, i32) {
    %c0_i32 = arith.constant 0 : i32
    %c0_i32_0 = arith.constant 0 : i32
    %c0_i32_1 = arith.constant 0 : i32
    return %c0_i32, %c0_i32_0 : i32, i32
  }
  func.func @transform_4(%arg0: i32) -> (i32, i32) {
    %c0_i32 = arith.constant 0 : i32
    %c0_i32_0 = arith.constant 0 : i32
    %c0_i32_1 = arith.constant 0 : i32
    return %c0_i32, %c0_i32_0 : i32, i32
  }
  func.func @transform_5(%arg0: i32) -> (i32, i32) {
    %c0_i32 = arith.constant 0 : i32
    %c0_i32_0 = arith.constant 0 : i32
    return %arg0, %c0_i32 : i32, i32
  }
}

</mosaic_0001>

<bundles_post_ra>
// kernel: tpu_custom_call.1
= control target key start
LH: loop header
LB: loop body
LE: loop exit
PB: predicated region body
PF: predicated region fallthrough
CT: control target
= control target key end

     0   :  { %s4047_s0 = inlined_call_operand.hbm [shape: f32[8,768], index: 0, kind: input, shape index: {}]   ;;  %s4048_s1 = inlined_call_operand.hbm [shape: bf16[768,768], index: 1, kind: input, shape index: {}]   ;;  %s4049_s2 = inlined_call_operand.hbm [shape: f32[1,768], index: 2, kind: input, shape index: {}]   ;;  %s4050_s3 = inlined_call_operand.vmem [shape: f32[768,1], index: 3, kind: input, shape index: {}]   ;;  %s4051_s4 = inlined_call_operand.<no memory space> [shape: f32[1,1], index: 4, kind: input, shape index: {}]   ;;  %s4052_s5 = inlined_call_operand.hbm [shape: f32[8,128], index: 5, kind: output, shape index: {}]  }
   0x1   :  { %v10_v0 = vstv %s4051_s4 }
   0x2   :  { %11 = vst [vmem:[#allocation2] sm:$0x1] %v10_v0 }
   0x3   :  { %12 = vsyncpa [#allocation4], 0 }
   0x4   :  { %13 = vsyncpa [#allocation7], 0 }
   0x5   :  { %14 = vsyncpa [#allocation5], 0  ;;  %s3617_s20 = smov [#allocation6]   ;;  %s3523_s24 = scalar_lea.hbm %s4048_s1, 36864 }
   0x6   :  { %s30_s21 = sshll.u32 %s3617_s20, 4  ;;  %p3524_p0 = scmp.ne.s32.totalorder %s4048_s1, %s3523_s24  ;;  %s31_s21 = int_to_ptr.vmem [resolvable:$true] %s30_s21 }
   0x7   :  { %p3527_p1 = scmp.lt.u32.totalorder %s3523_s24, %s4048_s1 }
   0x9   :  { %p3529_p2 = pnand %p3527_p1, %p3524_p0 }
   0xb   :  { %3532 = shalt.err (!%p3529_p2)
}
   0xc   :  { %s3533_s4 = scalar_lea.vmem %s31_s21, 36864  ;;  %p3538_p4 = scmp.lt.s32.totalorder %s31_s21, %s31_s21 }
   0xd   :  { %p3534_p3 = scmp.ne.s32.totalorder %s31_s21, %s3533_s4  ;;  %p3539_p5 = scmp.lt.s32.totalorder %s3533_s4, %s3533_s4 }
   0xf   :  { %p3540_p6 = por %p3539_p5, %p3538_p4 }
  0x11   :  { %p3541_p7 = pnand %p3540_p6, %p3534_p3 }
  0x13   :  { %3544 = shalt.err (!%p3541_p7)
}
  0x14   :  { %s3618_s29 = smov 384   ;;  %s3619_s30 = smov 24  }
  0x15   :  { %36 = dma.hbm_to_vmem [thread:$0]  %s4048_s1, 36864, %s31_s21, [#allocation7], %s3618_s29, %s3618_s29, %s3619_s30  }
  0x16   :  { %s3620_s8 = smov [#allocation3]   ;;  %s3621_s10 = smov [#allocation8]  }
  0x17   :  { %s21_s9 = sshll.u32 %s3620_s8, 4  ;;  %s43_s11 = sshll.u32 %s3621_s10, 4  ;;  %s22_s9 = int_to_ptr.vmem [resolvable:$true] %s21_s9  ;;  %s44_s11 = int_to_ptr.vmem [resolvable:$true] %s43_s11 }
  0x18   :  { %s3545_s14 = scalar_lea.hbm %s4047_s0, 768 }
  0x19   :  { %p3546_p8 = scmp.ne.s32.totalorder %s4047_s0, %s3545_s14  ;;  %p3549_p9 = scmp.lt.u32.totalorder %s3545_s14, %s4047_s0 }
  0x1b   :  { %p3551_p10 = pnand %p3549_p9, %p3546_p8 }
  0x1d   :  { %3554 = shalt.err (!%p3551_p10)
}
  0x1e   :  { %s3555_s1 = scalar_lea.vmem %s22_s9, 768  ;;  %p3560_p12 = scmp.lt.s32.totalorder %s22_s9, %s22_s9 }
  0x1f   :  { %p3556_p11 = scmp.ne.s32.totalorder %s22_s9, %s3555_s1  ;;  %p3561_p13 = scmp.lt.s32.totalorder %s3555_s1, %s3555_s1 }
  0x21   :  { %p3562_p0 = por %p3561_p13, %p3560_p12 }
  0x23   :  { %p3563_p1 = pnand %p3562_p0, %p3556_p11 }
  0x25   :  { %3566 = shalt.err (!%p3563_p1)
}
  0x26   :  { %24 = dma.hbm_to_vmem [thread:$0]  %s4047_s0, 768, %s22_s9, [#allocation4]  }
  0x27   :  { %s3567_s23 = scalar_lea.hbm %s4049_s2, 96 }
  0x28   :  { %p3568_p2 = scmp.ne.s32.totalorder %s4049_s2, %s3567_s23  ;;  %p3571_p3 = scmp.lt.u32.totalorder %s3567_s23, %s4049_s2 }
  0x2a   :  { %p3573_p4 = pnand %p3571_p3, %p3568_p2 }
  0x2c   :  { %3576 = shalt.err (!%p3573_p4)
}
  0x2d   :  { %s3577_s28 = scalar_lea.vmem %s44_s11, 96  ;;  %p3582_p6 = scmp.lt.s32.totalorder %s44_s11, %s44_s11 }
  0x2e   :  { %p3578_p5 = scmp.ne.s32.totalorder %s44_s11, %s3577_s28  ;;  %p3583_p7 = scmp.lt.s32.totalorder %s3577_s28, %s3577_s28 }
  0x30   :  { %p3584_p8 = por %p3583_p7, %p3582_p6 }
  0x32   :  { %p3585_p9 = pnand %p3584_p8, %p3578_p5 }
  0x34   :  { %3588 = shalt.err (!%p3585_p9)
}
  0x35   :  { %46 = dma.hbm_to_vmem [thread:$0]  %s4049_s2, 96, %s44_s11, [#allocation7]  }
  0x36   :  { %3611 = dma.done.wait [#allocation4], 768  }
  0x37   :  { %3612 = vsyncadd [#allocation4], 4294966528 }
  0x38   :  { %3613 = dma.done.wait [#allocation7], 36960  }
  0x39   :  { %3614 = vsyncadd [#allocation7], 4294930336  ;;  %v3087_v1 = vld [vmem:[#allocation6 + $0x4] ss:$24 sps:$4 sm:$0xff]   ;;  %v3091_v3 = vld [vmem:[#allocation6] ss:$24 sps:$4 sm:$0xff]  }
  0x3a   :  { %v3089_v2 = vld [vmem:[#allocation6 + $0x304] ss:$24 sps:$4 sm:$0xff]   ;;  %1832 = vmatprep.subr.bf16.mxu1 %v3087_v1  ;;  %v3092_v4 = vld [vmem:[#allocation6 + $0x300] ss:$24 sps:$4 sm:$0xff]   ;;  %v3093_v5 = vld [vmem:[#allocation6 + $0x34] ss:$24 sps:$4 sm:$0xff]  }
  0x3b   :  { %1873 = vmatprep.subr.bf16.mxu0 %v3089_v2  ;;  %1833 = vmatpush1.bf16.msra.mxu1 %v3091_v3  ;;  %v3095_v6 = vld [vmem:[#allocation6 + $0x334] ss:$24 sps:$4 sm:$0xff]   ;;  %v3097_v7 = vld [vmem:[#allocation6 + $0x30] ss:$24 sps:$4 sm:$0xff]   ;;  %v3099_v9 = vld [vmem:[#allocation6 + $0x64] ss:$24 sps:$4 sm:$0xff]  }
  0x3c   :  { %1874 = vmatpush1.bf16.msra.mxu0 %v3092_v4  ;;  %1834 = vmatprep.subr.bf16.mxu1 %v3093_v5  ;;  %v3098_v8 = vld [vmem:[#allocation6 + $0x330] ss:$24 sps:$4 sm:$0xff]   ;;  %v3101_v10 = vld [vmem:[#allocation6 + $0x364] ss:$24 sps:$4 sm:$0xff]   ;;  %v3103_v11 = vld [vmem:[#allocation6 + $0x60] ss:$24 sps:$4 sm:$0xff]  }
  0x3d   :  { %1875 = vmatprep.subr.bf16.mxu0 %v3095_v6  ;;  %v3104_v12 = vld [vmem:[#allocation6 + $0x360] ss:$24 sps:$4 sm:$0xff]   ;;  %v3105_v13 = vld [vmem:[#allocation6 + $0x94] ss:$24 sps:$4 sm:$0xff]   ;;  %v3109_v15 = vld [vmem:[#allocation6 + $0x90] ss:$24 sps:$4 sm:$0xff]  }
  0x3e   :  { %v3107_v14 = vld [vmem:[#allocation6 + $0x394] ss:$24 sps:$4 sm:$0xff]   ;;  %v3110_v16 = vld [vmem:[#allocation6 + $0x390] ss:$24 sps:$4 sm:$0xff]   ;;  %v3111_v17 = vld [vmem:[#allocation6 + $0xc4] ss:$24 sps:$4 sm:$0xff]  }
  0x3f   :  { %1835 = vmatpush1.bf16.msra.mxu1 %v3097_v7  ;;  %v3113_v18 = vld [vmem:[#allocation6 + $0x3c4] ss:$24 sps:$4 sm:$0xff]   ;;  %v3115_v19 = vld [vmem:[#allocation6 + $0xc0] ss:$24 sps:$4 sm:$0xff]   ;;  %v3117_v21 = vld [vmem:[#allocation6 + $0xf4] ss:$24 sps:$4 sm:$0xff]  }
  0x40   :  { %1876 = vmatpush1.bf16.msra.mxu0 %v3098_v8  ;;  %1836 = vmatprep.subr.bf16.mxu1 %v3099_v9  ;;  %v3116_v20 = vld [vmem:[#allocation6 + $0x3c0] ss:$24 sps:$4 sm:$0xff]   ;;  %v3119_v22 = vld [vmem:[#allocation6 + $0x3f4] ss:$24 sps:$4 sm:$0xff]   ;;  %v3121_v23 = vld [vmem:[#allocation6 + $0xf0] ss:$24 sps:$4 sm:$0xff]  }
  0x41   :  { %1877 = vmatprep.subr.bf16.mxu0 %v3101_v10  ;;  %v3122_v24 = vld [vmem:[#allocation6 + $0x3f0] ss:$24 sps:$4 sm:$0xff]   ;;  %v3123_v25 = vld [vmem:[#allocation6 + $0x124] ss:$24 sps:$4 sm:$0xff]   ;;  %v3127_v27 = vld [vmem:[#allocation6 + $0x120] ss:$24 sps:$4 sm:$0xff]  }
  0x42   :  { %v3125_v26 = vld [vmem:[#allocation6 + $0x424] ss:$24 sps:$4 sm:$0xff]   ;;  %v3128_v28 = vld [vmem:[#allocation6 + $0x420] ss:$24 sps:$4 sm:$0xff]   ;;  %v3129_v29 = vld [vmem:[#allocation6 + $0x154] ss:$24 sps:$4 sm:$0xff]  }
  0x43   :  { %1837 = vmatpush1.bf16.msra.mxu1 %v3103_v11  ;;  %v3131_v30 = vld [vmem:[#allocation6 + $0x454] ss:$24 sps:$4 sm:$0xff]   ;;  %v3133_v31 = vld [vmem:[#allocation6 + $0x150] ss:$24 sps:$4 sm:$0xff]   ;;  %v3135_v33 = vld [vmem:[#allocation6 + $0x184] ss:$24 sps:$4 sm:$0xff]  }
  0x44   :  { %1878 = vmatpush1.bf16.msra.mxu0 %v3104_v12  ;;  %1838 = vmatprep.subr.bf16.mxu1 %v3105_v13  ;;  %v3134_v32 = vld [vmem:[#allocation6 + $0x450] ss:$24 sps:$4 sm:$0xff]   ;;  %v3137_v34 = vld [vmem:[#allocation6 + $0x484] ss:$24 sps:$4 sm:$0xff]   ;;  %v3139_v35 = vld [vmem:[#allocation6 + $0x180] ss:$24 sps:$4 sm:$0xff]  }
  0x45   :  { %1879 = vmatprep.subr.bf16.mxu0 %v3107_v14  ;;  %v3140_v36 = vld [vmem:[#allocation6 + $0x480] ss:$24 sps:$4 sm:$0xff]   ;;  %v3141_v37 = vld [vmem:[#allocation6 + $0x1b4] ss:$24 sps:$4 sm:$0xff]   ;;  %v3145_v39 = vld [vmem:[#allocation6 + $0x1b0] ss:$24 sps:$4 sm:$0xff]  }
  0x46   :  { %v3143_v38 = vld [vmem:[#allocation6 + $0x4b4] ss:$24 sps:$4 sm:$0xff]   ;;  %v3146_v40 = vld [vmem:[#allocation6 + $0x4b0] ss:$24 sps:$4 sm:$0xff]   ;;  %v3147_v41 = vld [vmem:[#allocation6 + $0x1e4] ss:$24 sps:$4 sm:$0xff]  }
  0x47   :  { %1839 = vmatpush1.bf16.msra.mxu1 %v3109_v15  ;;  %v3149_v42 = vld [vmem:[#allocation6 + $0x4e4] ss:$24 sps:$4 sm:$0xff]   ;;  %v3151_v43 = vld [vmem:[#allocation6 + $0x1e0] ss:$24 sps:$4 sm:$0xff]   ;;  %v3153_v45 = vld [vmem:[#allocation6 + $0x214] ss:$24 sps:$4 sm:$0xff]  }
  0x48   :  { %1880 = vmatpush1.bf16.msra.mxu0 %v3110_v16  ;;  %1840 = vmatprep.subr.bf16.mxu1 %v3111_v17  ;;  %v3152_v44 = vld [vmem:[#allocation6 + $0x4e0] ss:$24 sps:$4 sm:$0xff]   ;;  %v3155_v46 = vld [vmem:[#allocation6 + $0x514] ss:$24 sps:$4 sm:$0xff]   ;;  %v3157_v50 = vld [vmem:[#allocation6 + $0x210] ss:$24 sps:$4 sm:$0xff]  }
  0x49   :  { %1881 = vmatprep.subr.bf16.mxu0 %v3113_v18  ;;  %v61_v47 = vld [vmem:[#allocation3 + $0x8] sm:$0xff]  ;;  %v63_v49 = vld [vmem:[#allocation3 + $0x18] sm:$0xff]  ;;  %v60_v6 = vld [vmem:[#allocation3] sm:$0xff] }
  0x4a   :  { %v3693_v48 = vpack.c.bf16 %v61_v47, %v61_v47  ;;  %v3158_v51 = vld [vmem:[#allocation6 + $0x510] ss:$24 sps:$4 sm:$0xff]   ;;  %v3695_v52 = vpack.c.bf16 %v63_v49, %v63_v49  ;;  %v3159_v53 = vld [vmem:[#allocation6 + $0x244] ss:$24 sps:$4 sm:$0xff]   ;;  %v3163_v55 = vld [vmem:[#allocation6 + $0x240] ss:$24 sps:$4 sm:$0xff]   ;;  %v3699_v11 = vpack.c.bf16 %v60_v6, %v60_v6 }
  0x4b   :  { %1841 = vmatpush1.bf16.msra.mxu1 %v3115_v19  ;;  %v3161_v54 = vld [vmem:[#allocation6 + $0x544] ss:$24 sps:$4 sm:$0xff]   ;;  %v3164_v56 = vld [vmem:[#allocation6 + $0x540] ss:$24 sps:$4 sm:$0xff]   ;;  %v3165_v57 = vld [vmem:[#allocation6 + $0x274] ss:$24 sps:$4 sm:$0xff]  }
  0x4c   :  { %1882 = vmatpush1.bf16.msra.mxu0 %v3116_v20  ;;  %1842 = vmatprep.subr.bf16.mxu1 %v3117_v21  ;;  %v3167_v58 = vld [vmem:[#allocation6 + $0x574] ss:$24 sps:$4 sm:$0xff]   ;;  %v3169_v59 = vld [vmem:[#allocation6 + $0x270] ss:$24 sps:$4 sm:$0xff]   ;;  %v3171_v61 = vld [vmem:[#allocation6 + $0x2a4] ss:$24 sps:$4 sm:$0xff]  }
  0x4d   :  { %1883 = vmatprep.subr.bf16.mxu0 %v3119_v22  ;;  %1864 = vmatprep.mubr.bf16.mxu1 %v3693_v48  ;;  %v3170_v60 = vld [vmem:[#allocation6 + $0x570] ss:$24 sps:$4 sm:$0xff]   ;;  %v3173_v62 = vld [vmem:[#allocation6 + $0x5a4] ss:$24 sps:$4 sm:$0xff]   ;;  %v3175_v63 = vld [vmem:[#allocation6 + $0x2a0] ss:$24 sps:$4 sm:$0xff]  }
  0x4e   :  { %1905 = vmatprep.mubr.bf16.mxu0 %v3695_v52  ;;  %v3176_v0 = vld [vmem:[#allocation6 + $0x5a0] ss:$24 sps:$4 sm:$0xff]   ;;  %v3177_v1 = vld [vmem:[#allocation6 + $0x2d4] ss:$24 sps:$4 sm:$0xff]   ;;  %v3181_v3 = vld [vmem:[#allocation6 + $0x2d0] ss:$24 sps:$4 sm:$0xff]  }
  0x4f   :  { %1843 = vmatpush1.bf16.msra.mxu1 %v3121_v23  ;;  %v3179_v2 = vld [vmem:[#allocation6 + $0x5d4] ss:$24 sps:$4 sm:$0xff]   ;;  %v3182_v4 = vld [vmem:[#allocation6 + $0x5d0] ss:$24 sps:$4 sm:$0xff]   ;;  %v3185_v5 = vld [vmem:[#allocation6 + $0x604] ss:$24 sps:$4 sm:$0xff]  }
  0x50   :  { %1884 = vmatpush1.bf16.msra.mxu0 %v3122_v24  ;;  %1844 = vmatprep.subr.bf16.mxu1 %v3123_v25  ;;  %v62_v7 = vld [vmem:[#allocation3 + $0x10] sm:$0xff]  ;;  %v3191_v13 = vld [vmem:[#allocation6 + $0x634] ss:$24 sps:$4 sm:$0xff]   ;;  %v3189_v15 = vld [vmem:[#allocation6 + $0x630] ss:$24 sps:$4 sm:$0xff]  }
  0x51   :  { %1885 = vmatprep.subr.bf16.mxu0 %v3125_v26  ;;  %v3188_v8 = vld [vmem:[#allocation6 + $0xc] ss:$24 sps:$4 sm:$0xff]   ;;  %v3183_v9 = vld [vmem:[#allocation6 + $0x600] ss:$24 sps:$4 sm:$0xff]   ;;  %v3701_v12 = vpack.c.bf16 %v62_v7, %v62_v7  ;;  %v3194_v14 = vld [vmem:[#allocation6 + $0x3c] ss:$24 sps:$4 sm:$0xff]  }
  0x52   :  { %v3186_v10 = vld [vmem:[#allocation6 + $0x8] ss:$24 sps:$4 sm:$0xff]   ;;  %v3192_v16 = vld [vmem:[#allocation6 + $0x38] ss:$24 sps:$4 sm:$0xff]   ;;  %v3197_v17 = vld [vmem:[#allocation6 + $0x664] ss:$24 sps:$4 sm:$0xff]  }
  0x53   :  { %1845 = vmatpush1.bf16.msra.mxu1 %v3127_v27  ;;  %v3200_v18 = vld [vmem:[#allocation6 + $0x6c] ss:$24 sps:$4 sm:$0xff]   ;;  %v3195_v19 = vld [vmem:[#allocation6 + $0x660] ss:$24 sps:$4 sm:$0xff]   ;;  %v3206_v22 = vld [vmem:[#allocation6 + $0x9c] ss:$24 sps:$4 sm:$0xff]  }
  0x54   :  { %1886 = vmatpush1.bf16.msra.mxu0 %v3128_v28  ;;  %1846 = vmatprep.subr.bf16.mxu1 %v3129_v29  ;;  %v3198_v20 = vld [vmem:[#allocation6 + $0x68] ss:$24 sps:$4 sm:$0xff]   ;;  %v3203_v21 = vld [vmem:[#allocation6 + $0x694] ss:$24 sps:$4 sm:$0xff]   ;;  %v3204_v24 = vld [vmem:[#allocation6 + $0x98] ss:$24 sps:$4 sm:$0xff]  }
  0x55   :  { %1887 = vmatprep.subr.bf16.mxu0 %v3131_v30  ;;  %v3201_v23 = vld [vmem:[#allocation6 + $0x690] ss:$24 sps:$4 sm:$0xff]   ;;  %v3209_v25 = vld [vmem:[#allocation6 + $0x6c4] ss:$24 sps:$4 sm:$0xff]   ;;  %v3207_v27 = vld [vmem:[#allocation6 + $0x6c0] ss:$24 sps:$4 sm:$0xff]  }
  0x56   :  { %v3212_v26 = vld [vmem:[#allocation6 + $0xcc] ss:$24 sps:$4 sm:$0xff]   ;;  %v3210_v28 = vld [vmem:[#allocation6 + $0xc8] ss:$24 sps:$4 sm:$0xff]   ;;  %v3218_v30 = vld [vmem:[#allocation6 + $0xfc] ss:$24 sps:$4 sm:$0xff]  }
  0x57   :  { %1847 = vmatpush1.bf16.msra.mxu1 %v3133_v31  ;;  %v3215_v29 = vld [vmem:[#allocation6 + $0x6f4] ss:$24 sps:$4 sm:$0xff]   ;;  %v3213_v31 = vld [vmem:[#allocation6 + $0x6f0] ss:$24 sps:$4 sm:$0xff]   ;;  %v3267_v7 = vld [vmem:[#allocation6 + $0x8a0] ss:$24 sps:$4 sm:$0xff]  }
  0x58   :  { %1888 = vmatpush1.bf16.msra.mxu0 %v3134_v32  ;;  %1848 = vmatprep.subr.bf16.mxu1 %v3135_v33  ;;  %v3216_v32 = vld [vmem:[#allocation6 + $0xf8] ss:$24 sps:$4 sm:$0xff]   ;;  %v3221_v33 = vld [vmem:[#allocation6 + $0x724] ss:$24 sps:$4 sm:$0xff]   ;;  %v3239_v47 = vld [vmem:[#allocation6 + $0x7b4] ss:$24 sps:$4 sm:$0xff]  }
  0x59   :  { %1889 = vmatprep.subr.bf16.mxu0 %v3137_v34  ;;  %v3224_v34 = vld [vmem:[#allocation6 + $0x12c] ss:$24 sps:$4 sm:$0xff]   ;;  %v3242_v49 = vld [vmem:[#allocation6 + $0x1bc] ss:$24 sps:$4 sm:$0xff]  }
  0x5a   :  { %v3272_v6 = vld [vmem:[#allocation6 + $0x2ac] ss:$24 sps:$4 sm:$0xff]  }
  0x5b   :  { %1849 = vmatpush1.bf16.msra.mxu1 %v3139_v35  ;;  %v65_v35 = vld [vmem:[#allocation3 + $0x28] sm:$0xff] }
  0x5c   :  { %1890 = vmatpush1.bf16.msra.mxu0 %v3140_v36  ;;  %1850 = vmatprep.subr.bf16.mxu1 %v3141_v37  ;;  %v3706_v36 = vpack.c.bf16 %v65_v35, %v65_v35  ;;  %v3219_v37 = vld [vmem:[#allocation6 + $0x720] ss:$24 sps:$4 sm:$0xff]  }
  0x5d   :  { %1891 = vmatprep.subr.bf16.mxu0 %v3143_v38  ;;  %v3222_v38 = vld [vmem:[#allocation6 + $0x128] ss:$24 sps:$4 sm:$0xff]  }
  0x5e   :  { %v3303_v35 = vld [vmem:[#allocation6 + $0x3c8] ss:$24 sps:$4 sm:$0xff]  }
  0x5f   :  { %1851 = vmatpush1.bf16.msra.mxu1 %v3145_v39  ;;  %v3227_v39 = vld [vmem:[#allocation6 + $0x754] ss:$24 sps:$4 sm:$0xff]  }
  0x60   :  { %1892 = vmatpush1.bf16.msra.mxu0 %v3146_v40  ;;  %1852 = vmatprep.subr.bf16.mxu1 %v3147_v41  ;;  %v3230_v40 = vld [vmem:[#allocation6 + $0x15c] ss:$24 sps:$4 sm:$0xff]   ;;  %v3225_v41 = vld [vmem:[#allocation6 + $0x750] ss:$24 sps:$4 sm:$0xff]  }
  0x61   :  { %1893 = vmatprep.subr.bf16.mxu0 %v3149_v42  ;;  %v3228_v42 = vld [vmem:[#allocation6 + $0x158] ss:$24 sps:$4 sm:$0xff]  }
  0x63   :  { %1853 = vmatpush1.bf16.msra.mxu1 %v3151_v43  ;;  %v3233_v43 = vld [vmem:[#allocation6 + $0x784] ss:$24 sps:$4 sm:$0xff]  }
  0x64   :  { %1894 = vmatpush1.bf16.msra.mxu0 %v3152_v44  ;;  %1854 = vmatprep.subr.bf16.mxu1 %v3153_v45  ;;  %v3236_v44 = vld [vmem:[#allocation6 + $0x18c] ss:$24 sps:$4 sm:$0xff]   ;;  %v3231_v45 = vld [vmem:[#allocation6 + $0x780] ss:$24 sps:$4 sm:$0xff]  }
  0x65   :  { %1895 = vmatprep.subr.bf16.mxu0 %v3155_v46  ;;  %v3234_v46 = vld [vmem:[#allocation6 + $0x188] ss:$24 sps:$4 sm:$0xff]  }
  0x67   :  { %1855 = vmatpush1.bf16.msra.mxu1 %v3157_v50  ;;  %v3237_v50 = vld [vmem:[#allocation6 + $0x7b0] ss:$24 sps:$4 sm:$0xff]  }
  0x68   :  { %1896 = vmatpush1.bf16.msra.mxu0 %v3158_v51  ;;  %1856 = vmatprep.subr.bf16.mxu1 %v3159_v53  ;;  %v3240_v51 = vld [vmem:[#allocation6 + $0x1b8] ss:$24 sps:$4 sm:$0xff]   ;;  %v3245_v53 = vld [vmem:[#allocation6 + $0x7e4] ss:$24 sps:$4 sm:$0xff]  }
  0x69   :  { %1897 = vmatprep.subr.bf16.mxu0 %v3161_v54  ;;  %v3248_v54 = vld [vmem:[#allocation6 + $0x1ec] ss:$24 sps:$4 sm:$0xff]  }
  0x6b   :  { %1857 = vmatpush1.bf16.msra.mxu1 %v3163_v55  ;;  %v3243_v55 = vld [vmem:[#allocation6 + $0x7e0] ss:$24 sps:$4 sm:$0xff]  }
  0x6c   :  { %1898 = vmatpush1.bf16.msra.mxu0 %v3164_v56  ;;  %1858 = vmatprep.subr.bf16.mxu1 %v3165_v57  ;;  %v3246_v56 = vld [vmem:[#allocation6 + $0x1e8] ss:$24 sps:$4 sm:$0xff]   ;;  %v3251_v57 = vld [vmem:[#allocation6 + $0x814] ss:$24 sps:$4 sm:$0xff]  }
  0x6d   :  { %1899 = vmatprep.subr.bf16.mxu0 %v3167_v58  ;;  %v3254_v58 = vld [vmem:[#allocation6 + $0x21c] ss:$24 sps:$4 sm:$0xff]  }
  0x6f   :  { %1859 = vmatpush1.bf16.msra.mxu1 %v3169_v59  ;;  %v3249_v59 = vld [vmem:[#allocation6 + $0x810] ss:$24 sps:$4 sm:$0xff]  }
  0x70   :  { %1900 = vmatpush1.bf16.msra.mxu0 %v3170_v60  ;;  %1860 = vmatprep.subr.bf16.mxu1 %v3171_v61  ;;  %v3252_v60 = vld [vmem:[#allocation6 + $0x218] ss:$24 sps:$4 sm:$0xff]   ;;  %v3257_v61 = vld [vmem:[#allocation6 + $0x844] ss:$24 sps:$4 sm:$0xff]  }
  0x71   :  { %1901 = vmatprep.subr.bf16.mxu0 %v3173_v62  ;;  %v3260_v62 = vld [vmem:[#allocation6 + $0x24c] ss:$24 sps:$4 sm:$0xff]  }
  0x73   :  { %1861 = vmatpush1.bf16.msra.mxu1 %v3175_v63  ;;  %v3255_v63 = vld [vmem:[#allocation6 + $0x840] ss:$24 sps:$4 sm:$0xff]  }
  0x74   :  { %1902 = vmatpush1.bf16.msra.mxu0 %v3176_v0  ;;  %1862 = vmatprep.subr.bf16.mxu1 %v3177_v1  ;;  %v3258_v0 = vld [vmem:[#allocation6 + $0x248] ss:$24 sps:$4 sm:$0xff]   ;;  %v3263_v1 = vld [vmem:[#allocation6 + $0x874] ss:$24 sps:$4 sm:$0xff]  }
  0x75   :  { %1903 = vmatprep.subr.bf16.mxu0 %v3179_v2  ;;  %v3266_v2 = vld [vmem:[#allocation6 + $0x27c] ss:$24 sps:$4 sm:$0xff]  }
  0x77   :  { %1863 = vmatpush1.bf16.msra.mxu1 %v3181_v3  ;;  %v3261_v3 = vld [vmem:[#allocation6 + $0x870] ss:$24 sps:$4 sm:$0xff]  }
  0x78   :  { %1904 = vmatpush1.bf16.msra.mxu0 %v3182_v4  ;;  %1955 = vmatprep.subr.bf16.mxu1 %v3188_v8  ;;  %v3264_v4 = vld [vmem:[#allocation6 + $0x278] ss:$24 sps:$4 sm:$0xff]   ;;  %v3270_v8 = vld [vmem:[#allocation6 + $0x2a8] ss:$24 sps:$4 sm:$0xff]  }
  0x79   :  { %1914 = vmatprep.subr.bf16.mxu0 %v3185_v5  ;;  %v3269_v5 = vld [vmem:[#allocation6 + $0x8a4] ss:$24 sps:$4 sm:$0xff]  }
  0x7a   :  { %1865 = vmatmul.mubr.bf16.vlgmr.msra.gmra.mrb[0].mxu1 %v3699_v11 }
  0x7b   :  { %1906 = vmatmul.mubr.bf16.vlgmr.msra.gmra.mrb[0].mxu0 %v3701_v12  ;;  %1956 = vmatpush1.bf16.msra.mxu1 %v3186_v10  ;;  %v3278_v10 = vld [vmem:[#allocation6 + $0x2dc] ss:$24 sps:$4 sm:$0xff]  }
  0x7c   :  { %1915 = vmatpush1.bf16.msra.mxu0 %v3183_v9  ;;  %1957 = vmatprep.subr.bf16.mxu1 %v3194_v14  ;;  %v3275_v9 = vld [vmem:[#allocation6 + $0x8d4] ss:$24 sps:$4 sm:$0xff]   ;;  %v3276_v14 = vld [vmem:[#allocation6 + $0x2d8] ss:$24 sps:$4 sm:$0xff]  }
  0x7d   :  { %1916 = vmatprep.subr.bf16.mxu0 %v3191_v13  ;;  %1987 = vmatprep.mubr.bf16.mxu1 %v3693_v48  ;;  %v3273_v13 = vld [vmem:[#allocation6 + $0x8d0] ss:$24 sps:$4 sm:$0xff]  }
  0x7e   :  { %1946 = vmatprep.mubr.bf16.mxu0 %v3706_v36 }
  0x7f   :  { %1958 = vmatpush1.bf16.msra.mxu1 %v3192_v16  ;;  %v3281_v16 = vld [vmem:[#allocation6 + $0x30c] ss:$24 sps:$4 sm:$0xff]  }
  0x80   :  { %1917 = vmatpush1.bf16.msra.mxu0 %v3189_v15  ;;  %1959 = vmatprep.subr.bf16.mxu1 %v3200_v18  ;;  %v64_v15 = vld [vmem:[#allocation3 + $0x20] sm:$0xff] }
  0x81   :  { %1918 = vmatprep.subr.bf16.mxu0 %v3197_v17  ;;  %v3284_v17 = vld [vmem:[#allocation6 + $0x14] ss:$24 sps:$4 sm:$0xff]   ;;  %v3709_v18 = vpack.c.bf16 %v64_v15, %v64_v15  ;;  %v3363_v15 = vld [vmem:[#allocation6 + $0x5a8] ss:$24 sps:$4 sm:$0xff]  }
  0x83   :  { %1960 = vmatpush1.bf16.msra.mxu1 %v3198_v20  ;;  %v3282_v20 = vld [vmem:[#allocation6 + $0x10] ss:$24 sps:$4 sm:$0xff]  }
  0x84   :  { %1919 = vmatpush1.bf16.msra.mxu0 %v3195_v19  ;;  %1961 = vmatprep.subr.bf16.mxu1 %v3206_v22  ;;  %v3279_v19 = vld [vmem:[#allocation6 + $0x308] ss:$24 sps:$4 sm:$0xff]   ;;  %v3290_v22 = vld [vmem:[#allocation6 + $0x44] ss:$24 sps:$4 sm:$0xff]  }
  0x85   :  { %1920 = vmatprep.subr.bf16.mxu0 %v3203_v21  ;;  %v3287_v21 = vld [vmem:[#allocation6 + $0x33c] ss:$24 sps:$4 sm:$0xff]  }
  0x87   :  { %1962 = vmatpush1.bf16.msra.mxu1 %v3204_v24  ;;  %v3288_v24 = vld [vmem:[#allocation6 + $0x40] ss:$24 sps:$4 sm:$0xff]  }
  0x88   :  { %1921 = vmatpush1.bf16.msra.mxu0 %v3201_v23  ;;  %1963 = vmatprep.subr.bf16.mxu1 %v3212_v26  ;;  %v3285_v23 = vld [vmem:[#allocation6 + $0x338] ss:$24 sps:$4 sm:$0xff]   ;;  %v3296_v26 = vld [vmem:[#allocation6 + $0x74] ss:$24 sps:$4 sm:$0xff]  }
  0x89   :  { %1922 = vmatprep.subr.bf16.mxu0 %v3209_v25  ;;  %v3293_v25 = vld [vmem:[#allocation6 + $0x36c] ss:$24 sps:$4 sm:$0xff]  }
  0x8b   :  { %1964 = vmatpush1.bf16.msra.mxu1 %v3210_v28  ;;  %v3294_v28 = vld [vmem:[#allocation6 + $0x70] ss:$24 sps:$4 sm:$0xff]  }
  0x8c   :  { %1923 = vmatpush1.bf16.msra.mxu0 %v3207_v27  ;;  %1965 = vmatprep.subr.bf16.mxu1 %v3218_v30  ;;  %v3291_v27 = vld [vmem:[#allocation6 + $0x368] ss:$24 sps:$4 sm:$0xff]   ;;  %v3302_v30 = vld [vmem:[#allocation6 + $0xa4] ss:$24 sps:$4 sm:$0xff]  }
  0x8d   :  { %1924 = vmatprep.subr.bf16.mxu0 %v3215_v29  ;;  %v3299_v29 = vld [vmem:[#allocation6 + $0x39c] ss:$24 sps:$4 sm:$0xff]  }
  0x8f   :  { %1966 = vmatpush1.bf16.msra.mxu1 %v3216_v32  ;;  %v3300_v32 = vld [vmem:[#allocation6 + $0xa0] ss:$24 sps:$4 sm:$0xff]  }
  0x90   :  { %1925 = vmatpush1.bf16.msra.mxu0 %v3213_v31  ;;  %1967 = vmatprep.subr.bf16.mxu1 %v3224_v34  ;;  %v3297_v31 = vld [vmem:[#allocation6 + $0x398] ss:$24 sps:$4 sm:$0xff]   ;;  %v3308_v34 = vld [vmem:[#allocation6 + $0xd4] ss:$24 sps:$4 sm:$0xff]  }
  0x91   :  { %1926 = vmatprep.subr.bf16.mxu0 %v3221_v33  ;;  %v3305_v33 = vld [vmem:[#allocation6 + $0x3cc] ss:$24 sps:$4 sm:$0xff]  }
  0x93   :  { %1968 = vmatpush1.bf16.msra.mxu1 %v3222_v38  ;;  %v3314_v38 = vld [vmem:[#allocation6 + $0x104] ss:$24 sps:$4 sm:$0xff]  }
  0x94   :  { %1927 = vmatpush1.bf16.msra.mxu0 %v3219_v37  ;;  %1969 = vmatprep.subr.bf16.mxu1 %v3230_v40  ;;  %v3311_v37 = vld [vmem:[#allocation6 + $0x3fc] ss:$24 sps:$4 sm:$0xff]   ;;  %v3312_v40 = vld [vmem:[#allocation6 + $0x100] ss:$24 sps:$4 sm:$0xff]  }
  0x95   :  { %1928 = vmatprep.subr.bf16.mxu0 %v3227_v39  ;;  %v3309_v39 = vld [vmem:[#allocation6 + $0x3f8] ss:$24 sps:$4 sm:$0xff]  }
  0x97   :  { %1970 = vmatpush1.bf16.msra.mxu1 %v3228_v42  ;;  %v3320_v42 = vld [vmem:[#allocation6 + $0x134] ss:$24 sps:$4 sm:$0xff]  }
  0x98   :  { %1929 = vmatpush1.bf16.msra.mxu0 %v3225_v41  ;;  %1971 = vmatprep.subr.bf16.mxu1 %v3236_v44  ;;  %v3317_v41 = vld [vmem:[#allocation6 + $0x42c] ss:$24 sps:$4 sm:$0xff]   ;;  %v3318_v44 = vld [vmem:[#allocation6 + $0x130] ss:$24 sps:$4 sm:$0xff]  }
  0x99   :  { %1930 = vmatprep.subr.bf16.mxu0 %v3233_v43  ;;  %v3315_v43 = vld [vmem:[#allocation6 + $0x428] ss:$24 sps:$4 sm:$0xff]  }
  0x9b   :  { %1972 = vmatpush1.bf16.msra.mxu1 %v3234_v46  ;;  %v3326_v46 = vld [vmem:[#allocation6 + $0x164] ss:$24 sps:$4 sm:$0xff]  }
  0x9c   :  { %1931 = vmatpush1.bf16.msra.mxu0 %v3231_v45  ;;  %1973 = vmatprep.subr.bf16.mxu1 %v3242_v49  ;;  %v3323_v45 = vld [vmem:[#allocation6 + $0x45c] ss:$24 sps:$4 sm:$0xff]   ;;  %v3324_v49 = vld [vmem:[#allocation6 + $0x160] ss:$24 sps:$4 sm:$0xff]  }
  0x9d   :  { %1932 = vmatprep.subr.bf16.mxu0 %v3239_v47  ;;  %v3321_v47 = vld [vmem:[#allocation6 + $0x458] ss:$24 sps:$4 sm:$0xff]  }
  0x9f   :  { %1974 = vmatpush1.bf16.msra.mxu1 %v3240_v51  ;;  %v3332_v51 = vld [vmem:[#allocation6 + $0x194] ss:$24 sps:$4 sm:$0xff]  }
  0xa0   :  { %1933 = vmatpush1.bf16.msra.mxu0 %v3237_v50  ;;  %1975 = vmatprep.subr.bf16.mxu1 %v3248_v54  ;;  %v3329_v50 = vld [vmem:[#allocation6 + $0x48c] ss:$24 sps:$4 sm:$0xff]   ;;  %v3330_v54 = vld [vmem:[#allocation6 + $0x190] ss:$24 sps:$4 sm:$0xff]  }
  0xa1   :  { %1934 = vmatprep.subr.bf16.mxu0 %v3245_v53  ;;  %v3327_v53 = vld [vmem:[#allocation6 + $0x488] ss:$24 sps:$4 sm:$0xff]  }
  0xa3   :  { %1976 = vmatpush1.bf16.msra.mxu1 %v3246_v56  ;;  %v3338_v56 = vld [vmem:[#allocation6 + $0x1c4] ss:$24 sps:$4 sm:$0xff]  }
  0xa4   :  { %1935 = vmatpush1.bf16.msra.mxu0 %v3243_v55  ;;  %1977 = vmatprep.subr.bf16.mxu1 %v3254_v58  ;;  %v3335_v55 = vld [vmem:[#allocation6 + $0x4bc] ss:$24 sps:$4 sm:$0xff]   ;;  %v3336_v58 = vld [vmem:[#allocation6 + $0x1c0] ss:$24 sps:$4 sm:$0xff]  }
  0xa5   :  { %1936 = vmatprep.subr.bf16.mxu0 %v3251_v57  ;;  %v3333_v57 = vld [vmem:[#allocation6 + $0x4b8] ss:$24 sps:$4 sm:$0xff]  }
  0xa7   :  { %1978 = vmatpush1.bf16.msra.mxu1 %v3252_v60  ;;  %v3344_v60 = vld [vmem:[#allocation6 + $0x1f4] ss:$24 sps:$4 sm:$0xff]  }
  0xa8   :  { %1937 = vmatpush1.bf16.msra.mxu0 %v3249_v59  ;;  %1979 = vmatprep.subr.bf16.mxu1 %v3260_v62  ;;  %v3341_v59 = vld [vmem:[#allocation6 + $0x4ec] ss:$24 sps:$4 sm:$0xff]   ;;  %v3342_v62 = vld [vmem:[#allocation6 + $0x1f0] ss:$24 sps:$4 sm:$0xff]  }
  0xa9   :  { %1938 = vmatprep.subr.bf16.mxu0 %v3257_v61  ;;  %v3339_v61 = vld [vmem:[#allocation6 + $0x4e8] ss:$24 sps:$4 sm:$0xff]  }
  0xab   :  { %1980 = vmatpush1.bf16.msra.mxu1 %v3258_v0  ;;  %v3350_v0 = vld [vmem:[#allocation6 + $0x224] ss:$24 sps:$4 sm:$0xff]  }
  0xac   :  { %1939 = vmatpush1.bf16.msra.mxu0 %v3255_v63  ;;  %1981 = vmatprep.subr.bf16.mxu1 %v3266_v2  ;;  %v3347_v63 = vld [vmem:[#allocation6 + $0x51c] ss:$24 sps:$4 sm:$0xff]   ;;  %v3348_v2 = vld [vmem:[#allocation6 + $0x220] ss:$24 sps:$4 sm:$0xff]  }
  0xad   :  { %1940 = vmatprep.subr.bf16.mxu0 %v3263_v1  ;;  %v3345_v1 = vld [vmem:[#allocation6 + $0x518] ss:$24 sps:$4 sm:$0xff]  }
  0xaf   :  { %1982 = vmatpush1.bf16.msra.mxu1 %v3264_v4  ;;  %v3356_v4 = vld [vmem:[#allocation6 + $0x254] ss:$24 sps:$4 sm:$0xff]  }
  0xb0   :  { %1941 = vmatpush1.bf16.msra.mxu0 %v3261_v3  ;;  %1983 = vmatprep.subr.bf16.mxu1 %v3272_v6  ;;  %v3353_v3 = vld [vmem:[#allocation6 + $0x54c] ss:$24 sps:$4 sm:$0xff]   ;;  %v3354_v6 = vld [vmem:[#allocation6 + $0x250] ss:$24 sps:$4 sm:$0xff]  }
  0xb1   :  { %1942 = vmatprep.subr.bf16.mxu0 %v3269_v5  ;;  %v3351_v5 = vld [vmem:[#allocation6 + $0x548] ss:$24 sps:$4 sm:$0xff]  }
  0xb3   :  { %1984 = vmatpush1.bf16.msra.mxu1 %v3270_v8  ;;  %v3362_v8 = vld [vmem:[#allocation6 + $0x284] ss:$24 sps:$4 sm:$0xff]  }
  0xb4   :  { %1943 = vmatpush1.bf16.msra.mxu0 %v3267_v7  ;;  %1985 = vmatprep.subr.bf16.mxu1 %v3278_v10  ;;  %v3359_v7 = vld [vmem:[#allocation6 + $0x57c] ss:$24 sps:$4 sm:$0xff]   ;;  %v3360_v10 = vld [vmem:[#allocation6 + $0x280] ss:$24 sps:$4 sm:$0xff]  }
  0xb5   :  { %1944 = vmatprep.subr.bf16.mxu0 %v3275_v9  ;;  %v3357_v9 = vld [vmem:[#allocation6 + $0x578] ss:$24 sps:$4 sm:$0xff]  }
  0xb7   :  { %1986 = vmatpush1.bf16.msra.mxu1 %v3276_v14  ;;  %v3368_v14 = vld [vmem:[#allocation6 + $0x2b4] ss:$24 sps:$4 sm:$0xff]  }
  0xb8   :  { %1945 = vmatpush1.bf16.msra.mxu0 %v3273_v13  ;;  %1996 = vmatprep.subr.bf16.mxu1 %v3281_v16  ;;  %v3365_v13 = vld [vmem:[#allocation6 + $0x5ac] ss:$24 sps:$4 sm:$0xff]   ;;  %v3366_v16 = vld [vmem:[#allocation6 + $0x2b0] ss:$24 sps:$4 sm:$0xff]  }
  0xb9   :  { %2078 = vmatprep.subr.bf16.mxu0 %v3284_v17  ;;  %v3371_v17 = vld [vmem:[#allocation6 + $0x5dc] ss:$24 sps:$4 sm:$0xff]  }
  0xba   :  { %1988 = vmatmul.mubr.bf16.vlgmr.msra.gmra.mrb[4].mxu1 %v3699_v11 }
  0xbb   :  { %1947 = vmatmul.mubr.bf16.vlgmr.msra.gmra.mrb[0].mxu0 %v3709_v18  ;;  %1997 = vmatpush1.bf16.msra.mxu1 %v3279_v19  ;;  %v3374_v19 = vld [vmem:[#allocation6 + $0x2e4] ss:$24 sps:$4 sm:$0xff]  }
  0xbc   :  { %2079 = vmatpush1.bf16.msra.mxu0 %v3282_v20  ;;  %1998 = vmatprep.subr.bf16.mxu1 %v3287_v21  ;;  %v3369_v20 = vld [vmem:[#allocation6 + $0x5d8] ss:$24 sps:$4 sm:$0xff]  }
  0xbd   :  { %2080 = vmatprep.subr.bf16.mxu0 %v3290_v22  ;;  %2028 = vmatprep.mubr.bf16.mxu1 %v3695_v52  ;;  %v3372_v21 = vld [vmem:[#allocation6 + $0x2e0] ss:$24 sps:$4 sm:$0xff]   ;;  %v3377_v22 = vld [vmem:[#allocation6 + $0x60c] ss:$24 sps:$4 sm:$0xff]  }
  0xbe   :  { %2110 = vmatprep.mubr.bf16.mxu0 %v3693_v48  ;;  %v3306_v48 = vld [vmem:[#allocation6 + $0xd0] ss:$24 sps:$4 sm:$0xff]  }
  0xbf   :  { %1999 = vmatpush1.bf16.msra.mxu1 %v3285_v23  ;;  %v3380_v23 = vld [vmem:[#allocation6 + $0x314] ss:$24 sps:$4 sm:$0xff]  }
  0xc0   :  { %2081 = vmatpush1.bf16.msra.mxu0 %v3288_v24  ;;  %2000 = vmatprep.subr.bf16.mxu1 %v3293_v25  ;;  %v3375_v24 = vld [vmem:[#allocation6 + $0x608] ss:$24 sps:$4 sm:$0xff]  }
  0xc1   :  { %2082 = vmatprep.subr.bf16.mxu0 %v3296_v26  ;;  %v3378_v25 = vld [vmem:[#allocation6 + $0x310] ss:$24 sps:$4 sm:$0xff]   ;;  %v3383_v26 = vld [vmem:[#allocation6 + $0x63c] ss:$24 sps:$4 sm:$0xff]  }
  0xc3   :  { %2001 = vmatpush1.bf16.msra.mxu1 %v3291_v27  ;;  %v3386_v27 = vld [vmem:[#allocation6 + $0x344] ss:$24 sps:$4 sm:$0xff]  }
  0xc4   :  { %2083 = vmatpush1.bf16.msra.mxu0 %v3294_v28  ;;  %2002 = vmatprep.subr.bf16.mxu1 %v3299_v29  ;;  %v3381_v28 = vld [vmem:[#allocation6 + $0x638] ss:$24 sps:$4 sm:$0xff]  }
  0xc5   :  { %2084 = vmatprep.subr.bf16.mxu0 %v3302_v30  ;;  %v3384_v29 = vld [vmem:[#allocation6 + $0x340] ss:$24 sps:$4 sm:$0xff]   ;;  %v3389_v30 = vld [vmem:[#allocation6 + $0x66c] ss:$24 sps:$4 sm:$0xff]  }
  0xc7   :  { %2003 = vmatpush1.bf16.msra.mxu1 %v3297_v31  ;;  %v3392_v31 = vld [vmem:[#allocation6 + $0x374] ss:$24 sps:$4 sm:$0xff]  }
  0xc8   :  { %2085 = vmatpush1.bf16.msra.mxu0 %v3300_v32  ;;  %2004 = vmatprep.subr.bf16.mxu1 %v3305_v33  ;;  %v3387_v32 = vld [vmem:[#allocation6 + $0x668] ss:$24 sps:$4 sm:$0xff]  }
  0xc9   :  { %2086 = vmatprep.subr.bf16.mxu0 %v3308_v34  ;;  %v3390_v33 = vld [vmem:[#allocation6 + $0x370] ss:$24 sps:$4 sm:$0xff]   ;;  %v3395_v34 = vld [vmem:[#allocation6 + $0x69c] ss:$24 sps:$4 sm:$0xff]  }
  0xcb   :  { %2005 = vmatpush1.bf16.msra.mxu1 %v3303_v35  ;;  %v3393_v35 = vld [vmem:[#allocation6 + $0x698] ss:$24 sps:$4 sm:$0xff]  }
  0xcc   :  { %2087 = vmatpush1.bf16.msra.mxu0 %v3306_v48  ;;  %2006 = vmatprep.subr.bf16.mxu1 %v3311_v37  ;;  %v3396_v48 = vld [vmem:[#allocation6 + $0x3a0] ss:$24 sps:$4 sm:$0xff]   ;;  %v3401_v37 = vld [vmem:[#allocation6 + $0x6cc] ss:$24 sps:$4 sm:$0xff]  }
  0xcd   :  { %2088 = vmatprep.subr.bf16.mxu0 %v3314_v38  ;;  %v3404_v38 = vld [vmem:[#allocation6 + $0x3d4] ss:$24 sps:$4 sm:$0xff]  }
  0xcf   :  { %2007 = vmatpush1.bf16.msra.mxu1 %v3309_v39  ;;  %v3399_v39 = vld [vmem:[#allocation6 + $0x6c8] ss:$24 sps:$4 sm:$0xff]  }
  0xd0   :  { %2089 = vmatpush1.bf16.msra.mxu0 %v3312_v40  ;;  %2008 = vmatprep.subr.bf16.mxu1 %v3317_v41  ;;  %v3407_v40 = vld [vmem:[#allocation6 + $0x6fc] ss:$24 sps:$4 sm:$0xff]  }
  0xd1   :  { %2090 = vmatprep.subr.bf16.mxu0 %v3320_v42  ;;  %v3410_v41 = vld [vmem:[#allocation6 + $0x404] ss:$24 sps:$4 sm:$0xff]   ;;  %v3405_v42 = vld [vmem:[#allocation6 + $0x6f8] ss:$24 sps:$4 sm:$0xff]  }
  0xd3   :  { %2009 = vmatpush1.bf16.msra.mxu1 %v3315_v43  ;;  %v3408_v43 = vld [vmem:[#allocation6 + $0x400] ss:$24 sps:$4 sm:$0xff]  }
  0xd4   :  { %2091 = vmatpush1.bf16.msra.mxu0 %v3318_v44  ;;  %2010 = vmatprep.subr.bf16.mxu1 %v3323_v45  ;;  %v3413_v44 = vld [vmem:[#allocation6 + $0x72c] ss:$24 sps:$4 sm:$0xff]  }
  0xd5   :  { %2092 = vmatprep.subr.bf16.mxu0 %v3326_v46  ;;  %v3416_v45 = vld [vmem:[#allocation6 + $0x434] ss:$24 sps:$4 sm:$0xff]   ;;  %v3411_v46 = vld [vmem:[#allocation6 + $0x728] ss:$24 sps:$4 sm:$0xff]  }
  0xd7   :  { %2011 = vmatpush1.bf16.msra.mxu1 %v3321_v47  ;;  %v3414_v47 = vld [vmem:[#allocation6 + $0x430] ss:$24 sps:$4 sm:$0xff]  }
  0xd8   :  { %2093 = vmatpush1.bf16.msra.mxu0 %v3324_v49  ;;  %2012 = vmatprep.subr.bf16.mxu1 %v3329_v50  ;;  %v3419_v49 = vld [vmem:[#allocation6 + $0x75c] ss:$24 sps:$4 sm:$0xff]  }
  0xd9   :  { %2094 = vmatprep.subr.bf16.mxu0 %v3332_v51  ;;  %v3422_v50 = vld [vmem:[#allocation6 + $0x464] ss:$24 sps:$4 sm:$0xff]   ;;  %v3417_v51 = vld [vmem:[#allocation6 + $0x758] ss:$24 sps:$4 sm:$0xff]  }
  0xdb   :  { %2013 = vmatpush1.bf16.msra.mxu1 %v3327_v53  ;;  %v3420_v53 = vld [vmem:[#allocation6 + $0x460] ss:$24 sps:$4 sm:$0xff]  }
  0xdc   :  { %2095 = vmatpush1.bf16.msra.mxu0 %v3330_v54  ;;  %2014 = vmatprep.subr.bf16.mxu1 %v3335_v55  ;;  %v3425_v54 = vld [vmem:[#allocation6 + $0x78c] ss:$24 sps:$4 sm:$0xff]  }
  0xdd   :  { %2096 = vmatprep.subr.bf16.mxu0 %v3338_v56  ;;  %v3428_v55 = vld [vmem:[#allocation6 + $0x494] ss:$24 sps:$4 sm:$0xff]   ;;  %v3423_v56 = vld [vmem:[#allocation6 + $0x788] ss:$24 sps:$4 sm:$0xff]  }
  0xdf   :  { %2015 = vmatpush1.bf16.msra.mxu1 %v3333_v57  ;;  %v3426_v57 = vld [vmem:[#allocation6 + $0x490] ss:$24 sps:$4 sm:$0xff]  }
  0xe0   :  { %2097 = vmatpush1.bf16.msra.mxu0 %v3336_v58  ;;  %2016 = vmatprep.subr.bf16.mxu1 %v3341_v59  ;;  %v3431_v58 = vld [vmem:[#allocation6 + $0x7bc] ss:$24 sps:$4 sm:$0xff]  }
  0xe1   :  { %2098 = vmatprep.subr.bf16.mxu0 %v3344_v60  ;;  %v3434_v59 = vld [vmem:[#allocation6 + $0x4c4] ss:$24 sps:$4 sm:$0xff]   ;;  %v3429_v60 = vld [vmem:[#allocation6 + $0x7b8] ss:$24 sps:$4 sm:$0xff]  }
  0xe3   :  { %2017 = vmatpush1.bf16.msra.mxu1 %v3339_v61  ;;  %v3432_v61 = vld [vmem:[#allocation6 + $0x4c0] ss:$24 sps:$4 sm:$0xff]  }
  0xe4   :  { %2099 = vmatpush1.bf16.msra.mxu0 %v3342_v62  ;;  %2018 = vmatprep.subr.bf16.mxu1 %v3347_v63  ;;  %v3437_v62 = vld [vmem:[#allocation6 + $0x7ec] ss:$24 sps:$4 sm:$0xff]  }
  0xe5   :  { %2100 = vmatprep.subr.bf16.mxu0 %v3350_v0  ;;  %v3440_v63 = vld [vmem:[#allocation6 + $0x4f4] ss:$24 sps:$4 sm:$0xff]   ;;  %v3435_v0 = vld [vmem:[#allocation6 + $0x7e8] ss:$24 sps:$4 sm:$0xff]  }
  0xe7   :  { %2019 = vmatpush1.bf16.msra.mxu1 %v3345_v1  ;;  %v3438_v1 = vld [vmem:[#allocation6 + $0x4f0] ss:$24 sps:$4 sm:$0xff]  }
  0xe8   :  { %2101 = vmatpush1.bf16.msra.mxu0 %v3348_v2  ;;  %2020 = vmatprep.subr.bf16.mxu1 %v3353_v3  ;;  %v3443_v2 = vld [vmem:[#allocation6 + $0x81c] ss:$24 sps:$4 sm:$0xff]  }
  0xe9   :  { %2102 = vmatprep.subr.bf16.mxu0 %v3356_v4  ;;  %v3446_v3 = vld [vmem:[#allocation6 + $0x524] ss:$24 sps:$4 sm:$0xff]   ;;  %v3441_v4 = vld [vmem:[#allocation6 + $0x818] ss:$24 sps:$4 sm:$0xff]  }
  0xeb   :  { %2021 = vmatpush1.bf16.msra.mxu1 %v3351_v5  ;;  %v3444_v5 = vld [vmem:[#allocation6 + $0x520] ss:$24 sps:$4 sm:$0xff]  }
  0xec   :  { %2103 = vmatpush1.bf16.msra.mxu0 %v3354_v6  ;;  %2022 = vmatprep.subr.bf16.mxu1 %v3359_v7  ;;  %v3449_v6 = vld [vmem:[#allocation6 + $0x84c] ss:$24 sps:$4 sm:$0xff]  }
  0xed   :  { %2104 = vmatprep.subr.bf16.mxu0 %v3362_v8  ;;  %v3452_v7 = vld [vmem:[#allocation6 + $0x554] ss:$24 sps:$4 sm:$0xff]   ;;  %v3447_v8 = vld [vmem:[#allocation6 + $0x848] ss:$24 sps:$4 sm:$0xff]  }
  0xef   :  { %2023 = vmatpush1.bf16.msra.mxu1 %v3357_v9  ;;  %v3450_v9 = vld [vmem:[#allocation6 + $0x550] ss:$24 sps:$4 sm:$0xff]  }
  0xf0   :  { %2105 = vmatpush1.bf16.msra.mxu0 %v3360_v10  ;;  %2024 = vmatprep.subr.bf16.mxu1 %v3365_v13  ;;  %v3455_v10 = vld [vmem:[#allocation6 + $0x87c] ss:$24 sps:$4 sm:$0xff]  }
  0xf1   :  { %2106 = vmatprep.subr.bf16.mxu0 %v3368_v14  ;;  %v3458_v13 = vld [vmem:[#allocation6 + $0x584] ss:$24 sps:$4 sm:$0xff]   ;;  %v3453_v14 = vld [vmem:[#allocation6 + $0x878] ss:$24 sps:$4 sm:$0xff]  }
  0xf3   :  { %2025 = vmatpush1.bf16.msra.mxu1 %v3363_v15  ;;  %v3456_v15 = vld [vmem:[#allocation6 + $0x580] ss:$24 sps:$4 sm:$0xff]  }
  0xf4   :  { %2107 = vmatpush1.bf16.msra.mxu0 %v3366_v16  ;;  %2026 = vmatprep.subr.bf16.mxu1 %v3371_v17  ;;  %v3461_v16 = vld [vmem:[#allocation6 + $0x8ac] ss:$24 sps:$4 sm:$0xff]  }
  0xf5   :  { %2108 = vmatprep.subr.bf16.mxu0 %v3374_v19  ;;  %v3464_v17 = vld [vmem:[#allocation6 + $0x5b4] ss:$24 sps:$4 sm:$0xff]   ;;  %v3459_v19 = vld [vmem:[#allocation6 + $0x8a8] ss:$24 sps:$4 sm:$0xff]  }
  0xf7   :  { %2027 = vmatpush1.bf16.msra.mxu1 %v3369_v20  ;;  %v3462_v20 = vld [vmem:[#allocation6 + $0x5b0] ss:$24 sps:$4 sm:$0xff]  }
  0xf8   :  { %2109 = vmatpush1.bf16.msra.mxu0 %v3372_v21  ;;  %2037 = vmatprep.subr.bf16.mxu1 %v3377_v22  ;;  %v3467_v21 = vld [vmem:[#allocation6 + $0x8dc] ss:$24 sps:$4 sm:$0xff]  }
  0xf9   :  { %2119 = vmatprep.subr.bf16.mxu0 %v3380_v23  ;;  %v3470_v22 = vld [vmem:[#allocation6 + $0x5e4] ss:$24 sps:$4 sm:$0xff]   ;;  %v2223_v23 = vld [vmem:[%s4050_s3 + $0x80] sm:$0xff] }
  0xfa   :  { %2029 = vmatmul.mubr.bf16.vlgmr.msra.gmra.mrb[4].mxu1 %v3701_v12 }
  0xfb   :  { %2111 = vmatmul.mubr.bf16.vlgmr.msra.gmra.mrb[4].mxu0 %v3699_v11  ;;  %2038 = vmatpush1.bf16.msra.mxu1 %v3375_v24  ;;  %v3398_v11 = vld [vmem:[#allocation6 + $0x3a4] ss:$24 sps:$4 sm:$0xff]  }
  0xfc   :  { %2120 = vmatpush1.bf16.msra.mxu0 %v3378_v25  ;;  %2039 = vmatprep.subr.bf16.mxu1 %v3383_v26  ;;  %v2224_v24 = vld [vmem:[%s4050_s3 + $0x88] sm:$0xff] }
  0xfd   :  { %2121 = vmatprep.subr.bf16.mxu0 %v3386_v27  ;;  %2069 = vmatprep.mubr.bf16.mxu1 %v3706_v36  ;;  %v3465_v25 = vld [vmem:[#allocation6 + $0x8d8] ss:$24 sps:$4 sm:$0xff]   ;;  %v3473_v27 = vld [vmem:[#allocation6 + $0x614] ss:$24 sps:$4 sm:$0xff]  }
  0xfe   :  { %2151 = vmatprep.mubr.bf16.mxu0 %v3695_v52  ;;  %v3402_v52 = vld [vmem:[#allocation6 + $0x3d0] ss:$24 sps:$4 sm:$0xff]   ;;  %v3468_v26 = vld [vmem:[#allocation6 + $0x5e0] ss:$24 sps:$4 sm:$0xff]  }
  0xff   :  { %2040 = vmatpush1.bf16.msra.mxu1 %v3381_v28  ;;  %v2955_v28 = vpack.c.bf16 %v2224_v24, %v2223_v23  ;;  %v3494_v23 = vld [vmem:[#allocation6 + $0x764] ss:$24 sps:$4 sm:$0xff]  }
 0x100   :  { %2122 = vmatpush1.bf16.msra.mxu0 %v3384_v29  ;;  %2041 = vmatprep.subr.bf16.mxu1 %v3389_v30  ;;  %v2207_v29 = vld [vmem:[%s4050_s3] sm:$0xff]  ;;  %v2208_v30 = vld [vmem:[%s4050_s3 + $0x8] sm:$0xff] }
 0x101   :  { %2123 = vmatprep.subr.bf16.mxu0 %v3392_v31  ;;  %v2225_v31 = vld [vmem:[%s4050_s3 + $0x90] sm:$0xff] }
 0x103   :  { %2042 = vmatpush1.bf16.msra.mxu1 %v3387_v32  ;;  %v2226_v32 = vld [vmem:[%s4050_s3 + $0x98] sm:$0xff] }
 0x104   :  { %2124 = vmatpush1.bf16.msra.mxu0 %v3390_v33  ;;  %2043 = vmatprep.subr.bf16.mxu1 %v3395_v34  ;;  %v3471_v33 = vld [vmem:[#allocation6 + $0x610] ss:$24 sps:$4 sm:$0xff]   ;;  %v2957_v34 = vpack.c.bf16 %v2208_v30, %v2207_v29  ;;  %v2256_v29 = vld [vmem:[%s4050_s3 + $0x188] sm:$0xff] }
 0x105   :  { %2125 = vmatprep.subr.bf16.mxu0 %v3398_v11  ;;  %v3476_v11 = vld [vmem:[#allocation6 + $0x644] ss:$24 sps:$4 sm:$0xff]   ;;  %v3492_v30 = vld [vmem:[#allocation6 + $0x760] ss:$24 sps:$4 sm:$0xff]  }
 0x107   :  { %2044 = vmatpush1.bf16.msra.mxu1 %v3393_v35  ;;  %v2959_v35 = vpack.c.bf16 %v2226_v32, %v2225_v31  ;;  %v3497_v32 = vld [vmem:[#allocation6 + $0x794] ss:$24 sps:$4 sm:$0xff]  }
 0x108   :  { %2126 = vmatpush1.bf16.msra.mxu0 %v3396_v48  ;;  %2045 = vmatprep.subr.bf16.mxu1 %v3401_v37  ;;  %v2209_v48 = vld [vmem:[%s4050_s3 + $0x10] sm:$0xff]  ;;  %v2210_v37 = vld [vmem:[%s4050_s3 + $0x18] sm:$0xff] }
 0x109   :  { %2127 = vmatprep.subr.bf16.mxu0 %v3404_v38  ;;  %v2227_v38 = vld [vmem:[%s4050_s3 + $0xa0] sm:$0xff] }
 0x10b   :  { %2046 = vmatpush1.bf16.msra.mxu1 %v3399_v39  ;;  %v2228_v39 = vld [vmem:[%s4050_s3 + $0xa8] sm:$0xff] }
 0x10c   :  { %2128 = vmatpush1.bf16.msra.mxu0 %v3402_v52  ;;  %2047 = vmatprep.subr.bf16.mxu1 %v3407_v40  ;;  %v3474_v52 = vld [vmem:[#allocation6 + $0x640] ss:$24 sps:$4 sm:$0xff]   ;;  %v2961_v40 = vpack.c.bf16 %v2210_v37, %v2209_v48  ;;  %v3503_v48 = vld [vmem:[#allocation6 + $0x7f4] ss:$24 sps:$4 sm:$0xff]   ;;  %v3501_v37 = vld [vmem:[#allocation6 + $0x7f0] ss:$24 sps:$4 sm:$0xff]  }
 0x10d   :  { %2129 = vmatprep.subr.bf16.mxu0 %v3410_v41  ;;  %v3479_v41 = vld [vmem:[#allocation6 + $0x674] ss:$24 sps:$4 sm:$0xff]  }
 0x10f   :  { %2048 = vmatpush1.bf16.msra.mxu1 %v3405_v42  ;;  %v2963_v42 = vpack.c.bf16 %v2228_v39, %v2227_v38  ;;  %v3506_v38 = vld [vmem:[#allocation6 + $0x824] ss:$24 sps:$4 sm:$0xff]   ;;  %v3504_v39 = vld [vmem:[#allocation6 + $0x820] ss:$24 sps:$4 sm:$0xff]  }
 0x110   :  { %2130 = vmatpush1.bf16.msra.mxu0 %v3408_v43  ;;  %2049 = vmatprep.subr.bf16.mxu1 %v3413_v44  ;;  %v2211_v43 = vld [vmem:[%s4050_s3 + $0x20] sm:$0xff]  ;;  %v2212_v44 = vld [vmem:[%s4050_s3 + $0x28] sm:$0xff] }
 0x111   :  { %2131 = vmatprep.subr.bf16.mxu0 %v3416_v45  ;;  %v2230_v45 = vld [vmem:[%s4050_s3 + $0xb8] sm:$0xff] }
 0x113   :  { %2050 = vmatpush1.bf16.msra.mxu1 %v3411_v46  ;;  %v3477_v46 = vld [vmem:[#allocation6 + $0x670] ss:$24 sps:$4 sm:$0xff]  }
 0x114   :  { %2132 = vmatpush1.bf16.msra.mxu0 %v3414_v47  ;;  %2051 = vmatprep.subr.bf16.mxu1 %v3419_v49  ;;  %v2965_v47 = vpack.c.bf16 %v2212_v44, %v2211_v43  ;;  %v3482_v49 = vld [vmem:[#allocation6 + $0x6a4] ss:$24 sps:$4 sm:$0xff]   ;;  %v3515_v43 = vld [vmem:[#allocation6 + $0x8b4] ss:$24 sps:$4 sm:$0xff]   ;;  %v3513_v44 = vld [vmem:[#allocation6 + $0x8b0] ss:$24 sps:$4 sm:$0xff]  }
 0x115   :  { %2133 = vmatprep.subr.bf16.mxu0 %v3422_v50 }
 0x117   :  { %2052 = vmatpush1.bf16.msra.mxu1 %v3417_v51  ;;  %v2214_v51 = vld [vmem:[%s4050_s3 + $0x38] sm:$0xff] }
 0x118   :  { %2134 = vmatpush1.bf16.msra.mxu0 %v3420_v53  ;;  %2053 = vmatprep.subr.bf16.mxu1 %v3425_v54  ;;  %v2231_v53 = vld [vmem:[%s4050_s3 + $0xc0] sm:$0xff]  ;;  %v2232_v54 = vld [vmem:[%s4050_s3 + $0xc8] sm:$0xff] }
 0x119   :  { %2135 = vmatprep.subr.bf16.mxu0 %v3428_v55  ;;  %v3480_v55 = vld [vmem:[#allocation6 + $0x6a0] ss:$24 sps:$4 sm:$0xff]  }
 0x11b   :  { %2054 = vmatpush1.bf16.msra.mxu1 %v3423_v56 }
 0x11c   :  { %2136 = vmatpush1.bf16.msra.mxu0 %v3426_v57  ;;  %2055 = vmatprep.subr.bf16.mxu1 %v3431_v58  ;;  %v3485_v57 = vld [vmem:[#allocation6 + $0x6d4] ss:$24 sps:$4 sm:$0xff]   ;;  %v2971_v58 = vpack.c.bf16 %v2232_v54, %v2231_v53 }
 0x11d   :  { %2137 = vmatprep.subr.bf16.mxu0 %v3434_v59  ;;  %v2215_v59 = vld [vmem:[%s4050_s3 + $0x40] sm:$0xff] }
 0x11f   :  { %2056 = vmatpush1.bf16.msra.mxu1 %v3429_v60  ;;  %v2216_v60 = vld [vmem:[%s4050_s3 + $0x48] sm:$0xff] }
 0x120   :  { %2138 = vmatpush1.bf16.msra.mxu0 %v3432_v61  ;;  %2057 = vmatprep.subr.bf16.mxu1 %v3437_v62  ;;  %v2233_v61 = vld [vmem:[%s4050_s3 + $0xd0] sm:$0xff]  ;;  %v2234_v62 = vld [vmem:[%s4050_s3 + $0xd8] sm:$0xff] }
 0x121   :  { %2139 = vmatprep.subr.bf16.mxu0 %v3440_v63  ;;  %v3483_v63 = vld [vmem:[#allocation6 + $0x6d0] ss:$24 sps:$4 sm:$0xff]  }
 0x123   :  { %2058 = vmatpush1.bf16.msra.mxu1 %v3435_v0  ;;  %v2973_v0 = vpack.c.bf16 %v2216_v60, %v2215_v59  ;;  %v2240_v59 = vld [vmem:[%s4050_s3 + $0x108] sm:$0xff] }
 0x124   :  { %2140 = vmatpush1.bf16.msra.mxu0 %v3438_v1  ;;  %2059 = vmatprep.subr.bf16.mxu1 %v3443_v2  ;;  %v3488_v1 = vld [vmem:[#allocation6 + $0x704] ss:$24 sps:$4 sm:$0xff]   ;;  %v2975_v2 = vpack.c.bf16 %v2234_v62, %v2233_v61 }
 0x125   :  { %2141 = vmatprep.subr.bf16.mxu0 %v3446_v3  ;;  %v2217_v3 = vld [vmem:[%s4050_s3 + $0x50] sm:$0xff] }
 0x126   :  { %v2257_v62 = vld [vmem:[%s4050_s3 + $0x190] sm:$0xff] }
 0x127   :  { %2060 = vmatpush1.bf16.msra.mxu1 %v3441_v4  ;;  %v2218_v4 = vld [vmem:[%s4050_s3 + $0x58] sm:$0xff] }
 0x128   :  { %2142 = vmatpush1.bf16.msra.mxu0 %v3444_v5  ;;  %2061 = vmatprep.subr.bf16.mxu1 %v3449_v6  ;;  %v2235_v5 = vld [vmem:[%s4050_s3 + $0xe0] sm:$0xff]  ;;  %v2236_v6 = vld [vmem:[%s4050_s3 + $0xe8] sm:$0xff] }
 0x129   :  { %2143 = vmatprep.subr.bf16.mxu0 %v3452_v7  ;;  %v3486_v7 = vld [vmem:[#allocation6 + $0x700] ss:$24 sps:$4 sm:$0xff]  }
 0x12b   :  { %2062 = vmatpush1.bf16.msra.mxu1 %v3447_v8  ;;  %v2977_v8 = vpack.c.bf16 %v2218_v4, %v2217_v3 }
 0x12c   :  { %2144 = vmatpush1.bf16.msra.mxu0 %v3450_v9  ;;  %2063 = vmatprep.subr.bf16.mxu1 %v3455_v10  ;;  %v3491_v9 = vld [vmem:[#allocation6 + $0x734] ss:$24 sps:$4 sm:$0xff]   ;;  %v2979_v10 = vpack.c.bf16 %v2236_v6, %v2235_v5  ;;  %v2241_v5 = vld [vmem:[%s4050_s3 + $0x110] sm:$0xff] }
 0x12d   :  { %2145 = vmatprep.subr.bf16.mxu0 %v3458_v13  ;;  %v2219_v13 = vld [vmem:[%s4050_s3 + $0x60] sm:$0xff]  ;;  %v2242_v6 = vld [vmem:[%s4050_s3 + $0x118] sm:$0xff] }
 0x12f   :  { %2064 = vmatpush1.bf16.msra.mxu1 %v3453_v14  ;;  %v2220_v14 = vld [vmem:[%s4050_s3 + $0x68] sm:$0xff] }
 0x130   :  { %2146 = vmatpush1.bf16.msra.mxu0 %v3456_v15  ;;  %2065 = vmatprep.subr.bf16.mxu1 %v3461_v16  ;;  %v2237_v16 = vld [vmem:[%s4050_s3 + $0xf0] sm:$0xff] }
 0x131   :  { %2147 = vmatprep.subr.bf16.mxu0 %v3464_v17  ;;  %v2238_v17 = vld [vmem:[%s4050_s3 + $0xf8] sm:$0xff] }
 0x133   :  { %2066 = vmatpush1.bf16.msra.mxu1 %v3459_v19 }
 0x134   :  { %2148 = vmatpush1.bf16.msra.mxu0 %v3462_v20  ;;  %2067 = vmatprep.subr.bf16.mxu1 %v3467_v21  ;;  %v3489_v20 = vld [vmem:[#allocation6 + $0x730] ss:$24 sps:$4 sm:$0xff]  }
 0x135   :  { %2149 = vmatprep.subr.bf16.mxu0 %v3470_v22  ;;  %v2981_v22 = vpack.c.bf16 %v2220_v14, %v2219_v13  ;;  %v2243_v13 = vld [vmem:[%s4050_s3 + $0x120] sm:$0xff]  ;;  %v2244_v14 = vld [vmem:[%s4050_s3 + $0x128] sm:$0xff] }
 0x137   :  { %2068 = vmatpush1.bf16.msra.mxu1 %v3465_v25  ;;  %v2983_v25 = vpack.c.bf16 %v2238_v17, %v2237_v16  ;;  %v2262_v16 = vld [vmem:[%s4050_s3 + $0x1b8] sm:$0xff]  ;;  %v2997_v17 = vpack.c.bf16 %v2244_v14, %v2243_v13  ;;  %v2276_v13 = vld [vmem:[%s4050_s3 + $0x228] sm:$0xff]  ;;  %v2293_v14 = vld [vmem:[%s4050_s3 + $0x2b0] sm:$0xff] }
 0x138   :  { %2150 = vmatpush1.bf16.msra.mxu0 %v3468_v26  ;;  %2956 = vmatprep.subr.bf16.mxu1 %v2955_v28  ;;  %v2221_v26 = vld [vmem:[%s4050_s3 + $0x70] sm:$0xff]  ;;  %v2255_v28 = vld [vmem:[%s4050_s3 + $0x180] sm:$0xff] }
 0x139   :  { %2160 = vmatprep.subr.bf16.mxu0 %v3473_v27  ;;  %v2222_v27 = vld [vmem:[%s4050_s3 + $0x78] sm:$0xff] }
 0x13a   :  { %2070 = vmatmul.mubr.bf16.vlgmr.msra.gmra.mrb[4].mxu1 %v3709_v18  ;;  %v2985_v31 = vpack.c.bf16 %v2222_v27, %v2221_v26  ;;  %v2247_v26 = vld [vmem:[%s4050_s3 + $0x140] sm:$0xff]  ;;  %v2248_v27 = vld [vmem:[%s4050_s3 + $0x148] sm:$0xff] }
 0x13b   :  { %2152 = vmatmul.mubr.bf16.vlgmr.msra.gmra.mrb[4].mxu0 %v3701_v12  ;;  %2958 = vmatpush3.bf16.msra.mxu1 %v2957_v34  ;;  %v2229_v12 = vld [vmem:[%s4050_s3 + $0xb0] sm:$0xff]  ;;  %v3495_v34 = vld [vmem:[#allocation6 + $0x790] ss:$24 sps:$4 sm:$0xff]  }
 0x13c   :  { %2161 = vmatpush1.bf16.msra.mxu0 %v3471_v33  ;;  %2960 = vmatprep.subr.bf16.mxu1 %v2959_v35  ;;  %v2967_v50 = vpack.c.bf16 %v2230_v45, %v2229_v12  ;;  %v2987_v33 = vpack.c.bf16 %v2256_v29, %v2255_v28  ;;  %v3498_v35 = vld [vmem:[#allocation6 + $0x7c0] ss:$24 sps:$4 sm:$0xff]   ;;  %v3518_v12 = vld [vmem:[#allocation6 + $0x8e4] ss:$24 sps:$4 sm:$0xff]  }
 0x13d   :  { %2162 = vmatprep.subr.bf16.mxu0 %v3476_v11  ;;  %2192 = vmatprep.mubr.bf16.mxu0 %v3706_v36  ;;  %v2213_v36 = vld [vmem:[%s4050_s3 + $0x30] sm:$0xff]  ;;  %v2266_v29 = vld [vmem:[%s4050_s3 + $0x1d8] sm:$0xff] }
 0x13e   :  { %v2969_v56 = vpack.c.bf16 %v2214_v51, %v2213_v36  ;;  %v3500_v11 = vld [vmem:[#allocation6 + $0x7c4] ss:$24 sps:$4 sm:$0xff]   ;;  %v3516_v45 = vld [vmem:[#allocation6 + $0x8e0] ss:$24 sps:$4 sm:$0xff]  }
 0x13f   :  { %2962 = vmatpush3.bf16.msra.mxu1 %v2961_v40  ;;  %v3507_v40 = vld [vmem:[#allocation6 + $0x850] ss:$24 sps:$4 sm:$0xff]   ;;  %v2265_v28 = vld [vmem:[%s4050_s3 + $0x1d0] sm:$0xff] }
 0x140   :  { %2163 = vmatpush1.bf16.msra.mxu0 %v3474_v52  ;;  %2964 = vmatprep.subr.bf16.mxu1 %v2963_v42  ;;  %v3509_v52 = vld [vmem:[#allocation6 + $0x854] ss:$24 sps:$4 sm:$0xff]   ;;  %v3510_v42 = vld [vmem:[#allocation6 + $0x880] ss:$24 sps:$4 sm:$0xff]  }
 0x141   :  { %2164 = vmatprep.subr.bf16.mxu0 %v3479_v41  ;;  %v3512_v41 = vld [vmem:[#allocation6 + $0x884] ss:$24 sps:$4 sm:$0xff]  }
 0x143   :  { %2966 = vmatpush3.bf16.msra.mxu1 %v2965_v47 }
 0x144   :  { %2165 = vmatpush1.bf16.msra.mxu0 %v3477_v46  ;;  %2968 = vmatprep.subr.bf16.mxu1 %v2967_v50  ;;  %v362_v46 = vlaneseq  ;;  %v3833_v50 = vld [vmem:[#allocation8] sm:$0x3f] }
 0x145   :  { %2166 = vmatprep.subr.bf16.mxu0 %v3482_v49 }
 0x146   :  { %v3830_v47 = vshrl.u32 %v362_v46, 7 }
 0x147   :  { %2970 = vmatpush3.bf16.msra.mxu1 %v2969_v56 }
 0x148   :  { %2167 = vmatpush1.bf16.msra.mxu0 %v3480_v55  ;;  %2972 = vmatprep.subr.bf16.mxu1 %v2971_v58  ;;  %v364_v49 = vsub.s32 0, %v3830_v47  ;;  %v368_v36 = vsub.s32 1, %v3830_v47  ;;  %v2239_v58 = vld [vmem:[%s4050_s3 + $0x100] sm:$0xff] }
 0x149   :  { %2168 = vmatprep.subr.bf16.mxu0 %v3485_v57 }
 0x14a   :  { %v365_v51 = vrot.slane %v3833_v50, %v364_v49  ;;  %v369_v53 = vrot.slane %v3833_v50, %v368_v36  ;;  %v372_v36 = vsub.s32 2, %v3830_v47 }
 0x14b   :  { %2974 = vmatpush3.bf16.msra.mxu1 %v2973_v0 }
 0x14c   :  { %2169 = vmatpush1.bf16.msra.mxu0 %v3483_v63  ;;  %2976 = vmatprep.subr.bf16.mxu1 %v2975_v2  ;;  %v2258_v63 = vld [vmem:[%s4050_s3 + $0x198] sm:$0xff]  ;;  %v2989_v2 = vpack.c.bf16 %v2240_v59, %v2239_v58  ;;  %v2272_v58 = vld [vmem:[%s4050_s3 + $0x208] sm:$0xff] }
 0x14d   :  { %2170 = vmatprep.subr.bf16.mxu0 %v3488_v1  ;;  %v3806_v15 = vpop.f32.mrb[0].mxu1  ;;  %v2991_v4 = vpack.c.bf16 %v2258_v63, %v2257_v62  ;;  %v2290_v62 = vld [vmem:[%s4050_s3 + $0x298] sm:$0xff] }
 0x14e   :  { %v3814_v19 = vpop.f32.mrb[1].mxu1  ;;  %v1867_v54 = vadd.f32 %v3806_v15, %v365_v51  ;;  %v2261_v15 = vld [vmem:[%s4050_s3 + $0x1b0] sm:$0xff]  ;;  %v376_v51 = vsub.s32 3, %v3830_v47 }
 0x14f   :  { %v1870_v21 = vpop.f32.mrb[2].mxu1  ;;  %2978 = vmatpush3.bf16.msra.mxu1 %v2977_v8  ;;  %v1869_v55 = vadd.f32 %v3814_v19, %v369_v53  ;;  %v2260_v8 = vld [vmem:[%s4050_s3 + $0x1a8] sm:$0xff]  ;;  %v2999_v19 = vpack.c.bf16 %v2262_v16, %v2261_v15  ;;  %v373_v53 = vrot.slane %v3833_v50, %v372_v36  ;;  %v2294_v15 = vld [vmem:[%s4050_s3 + $0x2b8] sm:$0xff] }
 0x150   :  { %2171 = vmatpush1.bf16.msra.mxu0 %v3486_v7  ;;  %v1871_v24 = vpop.f32.mrb[3].mxu1  ;;  %2980 = vmatprep.subr.bf16.mxu1 %v2979_v10  ;;  %v2259_v7 = vld [vmem:[%s4050_s3 + $0x1a0] sm:$0xff]  ;;  %v2246_v21 = vld [vmem:[%s4050_s3 + $0x138] sm:$0xff] }
 0x151   :  { %2172 = vmatprep.subr.bf16.mxu0 %v3491_v9  ;;  %v2993_v9 = vpack.c.bf16 %v2242_v6, %v2241_v5  ;;  %v2995_v10 = vpack.c.bf16 %v2260_v8, %v2259_v7  ;;  %v2274_v5 = vld [vmem:[%s4050_s3 + $0x218] sm:$0xff]  ;;  %v2291_v6 = vld [vmem:[%s4050_s3 + $0x2a0] sm:$0xff]  ;;  %v2292_v7 = vld [vmem:[%s4050_s3 + $0x2a8] sm:$0xff] }
 0x153   :  { %2982 = vmatpush3.bf16.msra.mxu1 %v2981_v22  ;;  %v2263_v22 = vld [vmem:[%s4050_s3 + $0x1c0] sm:$0xff] }
 0x154   :  { %2173 = vmatpush1.bf16.msra.mxu0 %v3489_v20  ;;  %2984 = vmatprep.subr.bf16.mxu1 %v2983_v25  ;;  %v2245_v20 = vld [vmem:[%s4050_s3 + $0x130] sm:$0xff] }
 0x155   :  { %2174 = vmatprep.subr.bf16.mxu0 %v3494_v23  ;;  %v2264_v23 = vld [vmem:[%s4050_s3 + $0x1c8] sm:$0xff]  ;;  %v3001_v24 = vpack.c.bf16 %v2246_v21, %v2245_v20  ;;  %v2278_v20 = vld [vmem:[%s4050_s3 + $0x238] sm:$0xff]  ;;  %v2295_v21 = vld [vmem:[%s4050_s3 + $0x2c0] sm:$0xff] }
 0x156   :  { %v3003_v25 = vpack.c.bf16 %v2264_v23, %v2263_v22  ;;  %v2296_v22 = vld [vmem:[%s4050_s3 + $0x2c8] sm:$0xff] }
 0x157   :  { %2986 = vmatpush3.bf16.msra.mxu1 %v2985_v31  ;;  %v3007_v31 = vpack.c.bf16 %v2266_v29, %v2265_v28  ;;  %v2298_v28 = vld [vmem:[%s4050_s3 + $0x2d8] sm:$0xff] }
 0x158   :  { %2175 = vmatpush1.bf16.msra.mxu0 %v3492_v30  ;;  %2988 = vmatprep.subr.bf16.mxu1 %v2987_v33  ;;  %v3005_v30 = vpack.c.bf16 %v2248_v27, %v2247_v26  ;;  %v2250_v33 = vld [vmem:[%s4050_s3 + $0x158] sm:$0xff]  ;;  %v2280_v26 = vld [vmem:[%s4050_s3 + $0x248] sm:$0xff]  ;;  %v2297_v27 = vld [vmem:[%s4050_s3 + $0x2d0] sm:$0xff] }
 0x159   :  { %2176 = vmatprep.subr.bf16.mxu0 %v3497_v32  ;;  %v2249_v32 = vld [vmem:[%s4050_s3 + $0x150] sm:$0xff] }
 0x15c   :  { %2177 = vmatpush1.bf16.msra.mxu0 %v3495_v34  ;;  %v2267_v34 = vld [vmem:[%s4050_s3 + $0x1e0] sm:$0xff] }
 0x15d   :  { %2178 = vmatprep.subr.bf16.mxu0 %v3500_v11  ;;  %v2268_v11 = vld [vmem:[%s4050_s3 + $0x1e8] sm:$0xff] }
 0x160   :  { %2179 = vmatpush1.bf16.msra.mxu0 %v3498_v35  ;;  %v3009_v35 = vpack.c.bf16 %v2250_v33, %v2249_v32  ;;  %v2282_v32 = vld [vmem:[%s4050_s3 + $0x258] sm:$0xff]  ;;  %v2299_v33 = vld [vmem:[%s4050_s3 + $0x2e0] sm:$0xff] }
 0x161   :  { %2180 = vmatprep.subr.bf16.mxu0 %v3503_v48  ;;  %v3011_v48 = vpack.c.bf16 %v2268_v11, %v2267_v34  ;;  %v2300_v34 = vld [vmem:[%s4050_s3 + $0x2e8] sm:$0xff] }
 0x164   :  { %2181 = vmatpush1.bf16.msra.mxu0 %v3501_v37  ;;  %v2251_v37 = vld [vmem:[%s4050_s3 + $0x160] sm:$0xff] }
 0x165   :  { %2182 = vmatprep.subr.bf16.mxu0 %v3506_v38  ;;  %v2252_v38 = vld [vmem:[%s4050_s3 + $0x168] sm:$0xff] }
 0x168   :  { %2183 = vmatpush1.bf16.msra.mxu0 %v3504_v39  ;;  %v2269_v39 = vld [vmem:[%s4050_s3 + $0x1f0] sm:$0xff] }
 0x169   :  { %2184 = vmatprep.subr.bf16.mxu0 %v3509_v52  ;;  %v2270_v52 = vld [vmem:[%s4050_s3 + $0x1f8] sm:$0xff] }
 0x16c   :  { %2185 = vmatpush1.bf16.msra.mxu0 %v3507_v40  ;;  %v3013_v40 = vpack.c.bf16 %v2252_v38, %v2251_v37  ;;  %v2284_v37 = vld [vmem:[%s4050_s3 + $0x268] sm:$0xff]  ;;  %v2301_v38 = vld [vmem:[%s4050_s3 + $0x2f0] sm:$0xff] }
 0x16d   :  { %2186 = vmatprep.subr.bf16.mxu0 %v3512_v41  ;;  %v3015_v41 = vpack.c.bf16 %v2270_v52, %v2269_v39  ;;  %v2302_v39 = vld [vmem:[%s4050_s3 + $0x2f8] sm:$0xff] }
 0x170   :  { %2187 = vmatpush1.bf16.msra.mxu0 %v3510_v42  ;;  %v2253_v42 = vld [vmem:[%s4050_s3 + $0x170] sm:$0xff] }
 0x171   :  { %2188 = vmatprep.subr.bf16.mxu0 %v3515_v43  ;;  %v2254_v43 = vld [vmem:[%s4050_s3 + $0x178] sm:$0xff] }
 0x174   :  { %2189 = vmatpush1.bf16.msra.mxu0 %v3513_v44  ;;  %v2287_v44 = vld [vmem:[%s4050_s3 + $0x280] sm:$0xff] }
 0x175   :  { %2190 = vmatprep.subr.bf16.mxu0 %v3518_v12  ;;  %v2288_v12 = vld [vmem:[%s4050_s3 + $0x288] sm:$0xff] }
 0x176   :  { %v3019_v49 = vpack.c.bf16 %v2288_v12, %v2287_v44  ;;  %v380_v44 = vsub.s32 4, %v3830_v47  ;;  %v384_v12 = vsub.s32 5, %v3830_v47  ;;  %v2848_v47 = vld [vmem:[#allocation2] ss:$0 sm:$0xff] }
 0x178   :  { %2191 = vmatpush1.bf16.msra.mxu0 %v3516_v45  ;;  %v3017_v45 = vpack.c.bf16 %v2254_v43, %v2253_v42  ;;  %v2286_v42 = vld [vmem:[%s4050_s3 + $0x278] sm:$0xff] }
 0x17b   :  { %2193 = vmatmul.mubr.bf16.vlgmr.msra.gmra.mrb[4].mxu0 %v3709_v18 }
 0x18e   :  { %v1948_v56 = vpop.f32.mrb[0].mxu0 }
 0x18f   :  { %v3052_v18 = vadd.f32 %v1948_v56, %v1867_v54  ;;  %v1950_v57 = vpop.f32.mrb[1].mxu0  ;;  %v377_v54 = vrot.slane %v3833_v50, %v376_v51 }
 0x190   :  { %v3054_v60 = vadd.f32 %v1950_v57, %v1869_v55  ;;  %v1952_v61 = vpop.f32.mrb[2].mxu0  ;;  %v2271_v57 = vld [vmem:[%s4050_s3 + $0x200] sm:$0xff] }
 0x191   :  { %v1953_v0 = vpop.f32.mrb[3].mxu0  ;;  %v2201_v3 = vmax.f32 %v3052_v18, 0.0  ;;  %v2289_v61 = vld [vmem:[%s4050_s3 + $0x290] sm:$0xff] }
 0x192   :  { %v2202_v1 = vmax.f32 %v3054_v60, 0.0 }
 0x194   :  { %2374 = vmatprep.mubr.f32.mxu1 %v2202_v1  ;;  %v3021_v1 = vpack.c.bf16 %v2272_v58, %v2271_v57 }
 0x195   :  { %2375 = vmatmul.mubr.f32.vlgmr.msra.gmra.mrb[8].mxu1 %v2201_v3  ;;  %v3023_v3 = vpack.c.bf16 %v2290_v62, %v2289_v61  ;;  %v3622_v61 = vmov 0  }
 0x196   :  { %2990 = vmatpush3.bf16.msra.mxu1 %v2989_v2  ;;  %3086 = vset.pattern.permute.xlu0 %v3622_v61 }
 0x197   :  { %2992 = vmatprep.subr.bf16.mxu1 %v2991_v4  ;;  %v2273_v4 = vld [vmem:[%s4050_s3 + $0x210] sm:$0xff] }
 0x198   :  { %v3025_v8 = vpack.c.bf16 %v2274_v5, %v2273_v4 }
 0x19a   :  { %2994 = vmatpush3.bf16.msra.mxu1 %v2993_v9  ;;  %v3027_v9 = vpack.c.bf16 %v2292_v7, %v2291_v6 }
 0x19b   :  { %2996 = vmatprep.subr.bf16.mxu1 %v2995_v10  ;;  %v2275_v10 = vld [vmem:[%s4050_s3 + $0x220] sm:$0xff] }
 0x19c   :  { %v3029_v16 = vpack.c.bf16 %v2276_v13, %v2275_v10  ;;  %v2527_v13 = vand.u32 127, %v362_v46 }
 0x19e   :  { %2998 = vmatpush3.bf16.msra.mxu1 %v2997_v17  ;;  %v3031_v17 = vpack.c.bf16 %v2294_v15, %v2293_v14  ;;  %vm2529_vm0 = vcmp.eq.s32.totalorder %v2527_v13, 1  ;;  %vm2528_vm1 = vcmp.eq.s32.totalorder %v2527_v13, 0 }
 0x19f   :  { %3000 = vmatprep.subr.bf16.mxu1 %v2999_v19  ;;  %v2277_v19 = vld [vmem:[%s4050_s3 + $0x230] sm:$0xff] }
 0x1a0   :  { %v3033_v23 = vpack.c.bf16 %v2278_v20, %v2277_v19 }
 0x1a2   :  { %3002 = vmatpush3.bf16.msra.mxu1 %v3001_v24  ;;  %v3035_v24 = vpack.c.bf16 %v2296_v22, %v2295_v21 }
 0x1a3   :  { %3004 = vmatprep.subr.bf16.mxu1 %v3003_v25  ;;  %v2279_v25 = vld [vmem:[%s4050_s3 + $0x240] sm:$0xff] }
 0x1a4   :  { %v3037_v29 = vpack.c.bf16 %v2280_v26, %v2279_v25 }
 0x1a6   :  { %3006 = vmatpush3.bf16.msra.mxu1 %v3005_v30  ;;  %v3039_v30 = vpack.c.bf16 %v2298_v28, %v2297_v27 }
 0x1a7   :  { %3008 = vmatprep.subr.bf16.mxu1 %v3007_v31  ;;  %v2281_v31 = vld [vmem:[%s4050_s3 + $0x250] sm:$0xff] }
 0x1a8   :  { %v3041_v11 = vpack.c.bf16 %v2282_v32, %v2281_v31 }
 0x1aa   :  { %3010 = vmatpush3.bf16.msra.mxu1 %v3009_v35  ;;  %v3043_v35 = vpack.c.bf16 %v2300_v34, %v2299_v33 }
 0x1ab   :  { %3012 = vmatprep.subr.bf16.mxu1 %v3011_v48  ;;  %v2283_v48 = vld [vmem:[%s4050_s3 + $0x260] sm:$0xff] }
 0x1ac   :  { %v3045_v52 = vpack.c.bf16 %v2284_v37, %v2283_v48 }
 0x1ae   :  { %3014 = vmatpush3.bf16.msra.mxu1 %v3013_v40  ;;  %v3047_v40 = vpack.c.bf16 %v2302_v39, %v2301_v38 }
 0x1af   :  { %3016 = vmatprep.subr.bf16.mxu1 %v3015_v41  ;;  %v2285_v41 = vld [vmem:[%s4050_s3 + $0x270] sm:$0xff]  ;;  %s3623_s3 = smov [#allocation9]  }
 0x1b0   :  { %v3049_v43 = vpack.c.bf16 %v2286_v42, %v2285_v41  ;;  %s2550_s20 = sshll.u32 %s3623_s3, 4  ;;  %s2551_s20 = int_to_ptr.vmem [resolvable:$true] %s2550_s20 }
 0x1b1   :  { %s3589_s21 = scalar_lea.vmem %s2551_s20, 128  ;;  %p3594_p11 = scmp.lt.s32.totalorder %s2551_s20, %s2551_s20 }
 0x1b2   :  { %3018 = vmatpush3.bf16.msra.mxu1 %v3017_v45  ;;  %v381_v45 = vrot.slane %v3833_v50, %v380_v44  ;;  %p3590_p10 = scmp.ne.s32.totalorder %s2551_s20, %s3589_s21  ;;  %p3595_p12 = scmp.lt.s32.totalorder %s3589_s21, %s3589_s21 }
 0x1b3   :  { %3020 = vmatprep.subr.bf16.mxu1 %v3019_v49  ;;  %v385_v49 = vrot.slane %v3833_v50, %v384_v12 }
 0x1b4   :  { %p3596_p13 = por %p3595_p12, %p3594_p11 }
 0x1b6   :  { %p3597_p0 = pnand %p3596_p13, %p3590_p10 }
 0x20d   :  { %v2071_v55 = vpop.f32.mrb[4].mxu1 }
 0x20e   :  { %v3055_v56 = vadd.f32 %v2071_v55, %v373_v53  ;;  %v2073_v18 = vpop.f32.mrb[5].mxu1 }
 0x20f   :  { %v3056_v59 = vadd.f32 %v2073_v18, %v377_v54  ;;  %v2075_v60 = vpop.f32.mrb[6].mxu1 }
 0x210   :  { %v2076_v63 = vpop.f32.mrb[7].mxu1  ;;  %v2203_v2 = vmax.f32 %v3055_v56, 0.0 }
 0x211   :  { %v2204_v0 = vmax.f32 %v3056_v59, 0.0 }
 0x213   :  { %2444 = vmatprep.mubr.f32.mxu1 %v2204_v0 }
 0x214   :  { %2445 = vmatmul.mubr.f32.vlgmr.msra.gmra.mrb[10].mxu1 %v2203_v2 }
 0x215   :  { %3022 = vmatpush3.bf16.msra.mxu1 %v3021_v1 }
 0x216   :  { %3024 = vmatprep.subr.bf16.mxu1 %v3023_v3 }
 0x219   :  { %3026 = vmatpush3.bf16.msra.mxu1 %v3025_v8 }
 0x21a   :  { %3028 = vmatprep.subr.bf16.mxu1 %v3027_v9 }
 0x21d   :  { %3030 = vmatpush3.bf16.msra.mxu1 %v3029_v16 }
 0x21e   :  { %3032 = vmatprep.subr.bf16.mxu1 %v3031_v17 }
 0x221   :  { %3034 = vmatpush3.bf16.msra.mxu1 %v3033_v23 }
 0x222   :  { %3036 = vmatprep.subr.bf16.mxu1 %v3035_v24 }
 0x225   :  { %3038 = vmatpush3.bf16.msra.mxu1 %v3037_v29 }
 0x226   :  { %3040 = vmatprep.subr.bf16.mxu1 %v3039_v30 }
 0x229   :  { %3042 = vmatpush3.bf16.msra.mxu1 %v3041_v11 }
 0x22a   :  { %3044 = vmatprep.subr.bf16.mxu1 %v3043_v35 }
 0x22d   :  { %3046 = vmatpush3.bf16.msra.mxu1 %v3045_v52 }
 0x22e   :  { %3048 = vmatprep.subr.bf16.mxu1 %v3047_v40 }
 0x231   :  { %3050 = vmatpush3.bf16.msra.mxu1 %v3049_v43 }
 0x24e   :  { %v2194_v36 = vpop.f32.mrb[4].mxu0 }
 0x24f   :  { %v3057_v51 = vadd.f32 %v2194_v36, %v381_v45  ;;  %v2196_v53 = vpop.f32.mrb[5].mxu0 }
 0x250   :  { %v3058_v54 = vadd.f32 %v2196_v53, %v385_v49  ;;  %v2198_v55 = vpop.f32.mrb[6].mxu0 }
 0x251   :  { %v2199_v56 = vpop.f32.mrb[7].mxu0  ;;  %v2205_v57 = vmax.f32 %v3057_v51, 0.0 }
 0x252   :  { %v2206_v18 = vmax.f32 %v3058_v54, 0.0 }
 0x254   :  { %2514 = vmatprep.mubr.f32.mxu1 %v2206_v18 }
 0x255   :  { %2515 = vmatmul.mubr.f32.vlgmr.msra.gmra.mrb[12].mxu1 %v2205_v57 }
 0x268   :  { %v2882_v58 = vpop.f32.mrb[8].mxu1 }
 0x269   :  { %v2883_v59 = vpop.f32.mrb[9].mxu1 }
 0x26a   :  { %v2884_v60 = vadd.f32 %v2883_v59, %v2882_v58 }
 0x26c   :  { %v2377_v0 = vadd.f32 %v2884_v60, %v2848_v47 }
 0x2e7   :  { %v2917_v62 = vpop.f32.mrb[10].mxu1 }
 0x2e8   :  { %v2918_v63 = vpop.f32.mrb[11].mxu1 }
 0x2e9   :  { %v2919_v50 = vadd.f32 %v2918_v63, %v2917_v62 }
 0x2eb   :  { %v2447_v1 = vadd.f32 %v2919_v50, %v2377_v0 }
 0x328   :  { %v2952_v2 = vpop.f32.mrb[12].mxu1 }
 0x329   :  { %v2953_v3 = vpop.f32.mrb[13].mxu1 }
 0x32a   :  { %v2954_v4 = vadd.f32 %v2953_v3, %v2952_v2 }
 0x32c   :  { %v2517_v5 = vadd.f32 %v2954_v4, %v2447_v1 }
 0x32e   :  { %v2849_v6 = vmul.f32 -1.442695, %v2517_v5 }
 0x330   :  { %3519 = vpow2.f32 %v2849_v6 }
 0x33a   :  { %v3520_v7 = vpop.eup %3519 }
 0x33b   :  { %v2523_v8 = vadd.f32 1.0, %v3520_v7 }
 0x33d   :  { %3521 = vrcp.f32 %v2523_v8 }
 0x347   :  { %v3522_v9 = vpop.eup %3521 }
 0x348   :  { %v2530_v10 = vsub.f32 1.0, %v3522_v9 }
 0x34a   :  { %2533 = vperm.xlu0 %3086, %v2530_v10  }
 0x34e   :  { %2539 = vperm.xlu0 %3086, %v3522_v9  }
 0x3c9   :  { %v2534_v14 = vpop.permute.xlu0 %2533 }
 0x3ca   :  { %v2536_v15 = vsel %vm2529_vm0, %v2534_v14, 0.0 }
 0x3cd   :  { %v2540_v16 = vpop.permute.xlu0 %2539 }
 0x3ce   :  { %v2542_v17 = vsel %vm2528_vm1, %v2540_v16, %v2536_v15 }
 0x3cf   :  { %2543 = vst [vmem:[#allocation9] sm:$0xff] %v2542_v17 }
 0x3d0   :  { %3600 = shalt.err (!%p3597_p0)
}
 0x3d1   :  { %s3601_s24 = scalar_lea.hbm %s4052_s5, 128 }
 0x3d2   :  { %p3602_p1 = scmp.ne.s32.totalorder %s4052_s5, %s3601_s24  ;;  %p3605_p2 = scmp.lt.u32.totalorder %s3601_s24, %s4052_s5 }
 0x3d4   :  { %p3607_p3 = pnand %p3605_p2, %p3602_p1 }
 0x3d6   :  { %3610 = shalt.err (!%p3607_p3)
}
 0x3d7   :  { %2553 = dma.vmem_to_hbm [thread:$0]  %s2551_s20, 128, %s4052_s5, [#allocation5]  }
 0x3d8   :  { %3615 = dma.done.wait [#allocation5], 128  }
 0x3d9   :  { %3616 = vsyncadd [#allocation5], 4294967168 }
 0x3da   :  { %2557 = vsyncpa [#allocation4], 1 }
 0x3db   :  { %2558 = vsyncpa [#allocation7], 1 }
 0x3dc   :  { %2559 = vsyncpa [#allocation5], 1 }

</bundles_post_ra>
